<compile_context>
chip_gen: v7x
topology: tpu7x:2x2x1
jax: 0.10.0
libtpu: 0.0.40
codegen_flags: <defaults>
</compile_context>

<pallas_src>
import math
import functools

import jax
import jax.numpy as jnp
from jax import lax
from jax.experimental import pallas as pl
from jax.experimental.pallas import tpu as pltpu


# ----------------------------------------------------------------------------
# Kernel: one grid step handles (batch b, query tile qi).
# ----------------------------------------------------------------------------
def block_kernel(xq_ref, xkv_hbm,
                 wqkv_ref, bqkv_ref, wp_ref, bp_ref,
                 w1_ref, b1_ref, w2_ref, b2_ref,
                 g1_ref, be1_ref, g2_ref, be2_ref,
                 o_ref,
                 xkv_buf, k_ref, v_ref, qh_ref, dma_sem,
                 *, n_heads):
    f32 = jnp.float32
    mxu_dt = wqkv_ref.dtype                      # bf16 weights -> bf16 MXU operands

    xq = xq_ref[0]                               # (TQ, C) f32 query-row tile
    TQ, C = xq.shape
    T = xkv_buf.shape[0]
    N = n_heads
    D = C // N
    scale = 1.0 / math.sqrt(D)

    b = pl.program_id(0)
    qi = pl.program_id(1)

    # --- once per batch: DMA full bf16 sequence, project fused K|V, store head-major ---
    @pl.when(qi == 0)
    def _fill_kv():
        cp = pltpu.make_async_copy(xkv_hbm.at[b], xkv_buf, dma_sem)
        cp.start()
        cp.wait()
        kv = jnp.dot(xkv_buf[...], wqkv_ref[:, C:],
                     preferred_element_type=f32) + bqkv_ref[0, C:]   # (T, 2C) f32
        kv_bf = kv.astype(mxu_dt)
        for h in range(N):                       # static unroll; once per batch only
            k_ref[h] = kv_bf[:, h * D:(h + 1) * D]
            v_ref[h] = kv_bf[:, C + h * D:C + (h + 1) * D]

    # --- Q projection for this query tile (1/sqrt(D) folded into q) ---------------------
    xq_m = xq.astype(mxu_dt)
    q = (jnp.dot(xq_m, wqkv_ref[:, :C], preferred_element_type=f32)
         + bqkv_ref[0, :C]) * scale
    q_bf = q.astype(mxu_dt)
    for h in range(N):                           # cast once; scatter heads to scratch
        qh_ref[h] = q_bf[:, h * D:(h + 1) * D]

    # --- causal mask for this query tile (additive, large finite negative) -------------
    q_base = qi * TQ
    rows = lax.broadcasted_iota(jnp.int32, (TQ, T), 0) + q_base
    cols = lax.broadcasted_iota(jnp.int32, (TQ, T), 1)
    mask_bias = jnp.where(cols <= rows, 0.0, -1e30).astype(f32)

    # --- per-head attention (fori_loop bounds live ranges); fold Wp slice per head ------
    def head_body(h, acc):
        qh = qh_ref[h]                           # (TQ, D) bf16
        kh = k_ref[h]                            # (T,  D) bf16
        vh = v_ref[h]                            # (T,  D) bf16
        s = lax.dot_general(qh, kh, (((1,), (1,)), ((), ())),
                            preferred_element_type=f32)              # (TQ, T)
        s = s + mask_bias
        m = jnp.max(s, axis=-1, keepdims=True)
        e = jnp.exp(s - m)
        p = e / jnp.sum(e, axis=-1, keepdims=True)   # exact normalization (accuracy)
        pv = jnp.dot(p.astype(mxu_dt), vh, preferred_element_type=f32)   # (TQ, D)
        off = pl.multiple_of(h * D, D)
        wp_h = wp_ref[pl.ds(off, D), :]              # (D, C) bf16 sublane slice
        return acc + jnp.dot(pv.astype(mxu_dt), wp_h, preferred_element_type=f32)

    att_out = lax.fori_loop(0, N, head_body, jnp.zeros((TQ, C), f32)) + bp_ref[0]

    # --- residual + LayerNorm 1 ----------------------------------------------------------
    def layernorm(h, g_r, b_r):
        mu = jnp.mean(h, axis=-1, keepdims=True)
        var = jnp.mean((h - mu) ** 2, axis=-1, keepdims=True)
        return (h - mu) * lax.rsqrt(var + 1e-5) * g_r[0] + b_r[0]

    x1 = layernorm(xq.astype(f32) + att_out, g1_ref, be1_ref)

    # --- MLP: Linear(C, 4C) -> GELU(exact erf) -> Linear(4C, C) --------------------------
    hmid = jnp.dot(x1.astype(mxu_dt), w1_ref[...],
                   preferred_element_type=f32) + b1_ref[0]
    hmid = 0.5 * hmid * (1.0 + lax.erf(hmid * (1.0 / math.sqrt(2.0))))
    mlp_out = jnp.dot(hmid.astype(mxu_dt), w2_ref[...],
                      preferred_element_type=f32) + b2_ref[0]

    # --- residual + LayerNorm 2 -----------------------------------------------------------
    x2 = layernorm(x1 + mlp_out, g2_ref, be2_ref)
    o_ref[0] = x2.astype(o_ref.dtype)


# ----------------------------------------------------------------------------
# Wrapper
# ----------------------------------------------------------------------------
def block_forward(x, params, n_heads, *, q_tile=None, mxu_dtype=jnp.bfloat16):
    B, T, C = x.shape
    H = 4 * C
    assert C % n_heads == 0
    D = C // n_heads

    (wq, bq, wk, bk, wv, bv, wp, bp,
     w1, b1, w2, b2, g1, be1, g2, be2) = params

    if q_tile is None:
        if T <= 256:
            q_tile = T
        else:
            q_tile = next((c for c in (256, 128, 64, 32, 16, 8) if T % c == 0), T)
    assert T % q_tile == 0  # TODO(synk): pad ragged T to a multiple of the query tile
    n_qt = T // q_tile

    f32 = jnp.float32
    # Fused QKV weight (C, 3C) / bias (1, 3C); matmul weights in bf16, everything else f32.
    w_qkv = jnp.concatenate([wq, wk, wv], axis=1).astype(mxu_dtype)
    b_qkv = jnp.concatenate([bq, bk, bv], axis=1).astype(f32)
    wp_c, w1_c, w2_c = (w.astype(mxu_dtype) for w in (wp, w1, w2))
    bp_c, b1_c, b2_c = (b.astype(f32) for b in (bp, b1, b2))
    g1_c, be1_c, g2_c, be2_c = (p.astype(f32) for p in (g1, be1, g2, be2))

    # K/V source only ever feeds the MXU -> ship it to the kernel as bf16, in HBM,
    # and copy it once per batch (single-buffered) instead of pipelining it per tile.
    x_kv = x.astype(mxu_dtype)

    vmem_spec = pl.BlockSpec(memory_space=pltpu.MemorySpace.VMEM)
    in_specs = [
        pl.BlockSpec((1, q_tile, C), lambda b, qi: (b, qi, 0)),   # query-row tile (f32)
        pl.BlockSpec(memory_space=pl.ANY),                        # full x (bf16), raw HBM
    ] + [vmem_spec] * 12
    out_spec = pl.BlockSpec((1, q_tile, C), lambda b, qi: (b, qi, 0))

    # ---- VMEM budget: weights + scratches + activation tiles + live intermediates ----
    w_isz = jnp.dtype(mxu_dtype).itemsize

    def pad(v, m):
        return ((v + m - 1) // m) * m

    sub_m = 16 if w_isz == 2 else 8
    lane_D = pad(D, 128)
    weight_bytes = (3 * C * C + C * C + C * H + H * C) * w_isz \
                   + (3 * C + C + H + C + 4 * C) * 4
    kv_scr_bytes = 2 * n_heads * pad(T, sub_m) * lane_D * w_isz          # K, V head-major
    qh_scr_bytes = n_heads * pad(q_tile, sub_m) * lane_D * w_isz         # Q heads
    xkv_buf_bytes = pad(T, sub_m) * pad(C, 128) * w_isz                  # DMA landing buf
    act_bytes = 2 * 2 * q_tile * C * 4                                   # xq + out tiles, 2-buf
    live_bytes = 4 * (T * 2 * C            # (T,2C) K/V projection intermediate
                      + 3 * q_tile * T     # scores / exp / probs per head
                      + 4 * q_tile * C     # q, att accumulator, x1, residuals
                      + 2 * q_tile * H)    # MLP hidden (+ bf16 copy slack)
    need = weight_bytes + kv_scr_bytes + qh_scr_bytes + xkv_buf_bytes \
           + act_bytes + live_bytes + (8 << 20)

    try:
        vmem_cap = int(pltpu.get_tpu_info().vmem_capacity_bytes)
    except Exception:
        vmem_cap = 64 << 20                # conservative: assume v7x per-core VMEM
    cap = max(vmem_cap - (16 << 20), 32 << 20)   # headroom for Mosaic internal scratch
    vmem_limit = int(min(max(need, 32 << 20), cap))

    kernel = functools.partial(block_kernel, n_heads=n_heads)
    return pl.pallas_call(
        kernel,
        out_shape=jax.ShapeDtypeStruct((B, T, C), x.dtype),
        grid=(B, n_qt),
        in_specs=in_specs,
        out_specs=out_spec,
        scratch_shapes=[
            pltpu.VMEM((T, C), mxu_dtype),                 # xkv DMA landing buffer
            pltpu.VMEM((n_heads, T, D), mxu_dtype),        # K, head-major, per batch
            pltpu.VMEM((n_heads, T, D), mxu_dtype),        # V, head-major, per batch
            pltpu.VMEM((n_heads, q_tile, D), mxu_dtype),   # Q heads for current tile
            pltpu.SemaphoreType.DMA,
        ],
        compiler_params=pltpu.CompilerParams(
            dimension_semantics=("parallel", "arbitrary"),
            vmem_limit_bytes=vmem_limit),
    )(x, x_kv, w_qkv, b_qkv, wp_c, bp_c, w1_c, b1_c, w2_c, b2_c,
      g1_c, be1_c, g2_c, be2_c)


# ----------------------------------------------------------------------------
# Pure-JAX f32 reference for correctness checking
# ----------------------------------------------------------------------------
def block_reference(x, params, n_heads):
    (wq, bq, wk, bk, wv, bv, wp, bp,
     w1, b1, w2, b2, g1, be1, g2, be2) = params
    B, T, C = x.shape
    N, D = n_heads, C // n_heads

    def lin(h, w, b):
        return h @ w + b[0]

    q = lin(x, wq, bq).reshape(B, T, N, D).transpose(0, 2, 1, 3)
    k = lin(x, wk, bk).reshape(B, T, N, D).transpose(0, 2, 1, 3)
    v = lin(x, wv, bv).reshape(B, T, N, D).transpose(0, 2, 1, 3)
    w = jnp.einsum('bntd,bnsd->bnts', q, k) / math.sqrt(D)
    mask = jnp.tril(jnp.ones((T, T), bool))
    w = jnp.where(mask[None, None], w, -jnp.inf)
    p = jax.nn.softmax(w, axis=-1)
    att = jnp.einsum('bnts,bnsd->bntd', p, v).transpose(0, 2, 1, 3).reshape(B, T, C)
    att = lin(att, wp, bp)

    def ln(h, g, b):
        mu = jnp.mean(h, axis=-1, keepdims=True)
        var = jnp.mean((h - mu) ** 2, axis=-1, keepdims=True)
        return (h - mu) * lax.rsqrt(var + 1e-5) * g[0] + b[0]

    x1 = ln(x + att, g1, be1)
    h = lin(x1, w1, b1)
    h = 0.5 * h * (1.0 + lax.erf(h / math.sqrt(2.0)))
    h = h @ w2 + b2[0]
    return ln(x1 + h, g2, be2)


# ----------------------------------------------------------------------------
def make_params(key, h_dim):
    H = 4 * h_dim
    keys = jax.random.split(key, 12)
    s = 0.02
    wq = jax.random.normal(keys[0], (h_dim, h_dim), jnp.float32) * s
    bq = jax.random.normal(keys[1], (1, h_dim), jnp.float32) * s
    wk = jax.random.normal(keys[2], (h_dim, h_dim), jnp.float32) * s
    bk = jax.random.normal(keys[3], (1, h_dim), jnp.float32) * s
    wv = jax.random.normal(keys[4], (h_dim, h_dim), jnp.float32) * s
    bv = jax.random.normal(keys[5], (1, h_dim), jnp.float32) * s
    wp = jax.random.normal(keys[6], (h_dim, h_dim), jnp.float32) * s
    bp = jax.random.normal(keys[7], (1, h_dim), jnp.float32) * s
    w1 = jax.random.normal(keys[8], (h_dim, H), jnp.float32) * s
    b1 = jax.random.normal(keys[9], (1, H), jnp.float32) * s
    w2 = jax.random.normal(keys[10], (H, h_dim), jnp.float32) * s
    b2 = jax.random.normal(keys[11], (1, h_dim), jnp.float32) * s
    g1 = jnp.ones((1, h_dim), jnp.float32)
    be1 = jnp.zeros((1, h_dim), jnp.float32)
    g2 = jnp.ones((1, h_dim), jnp.float32)
    be2 = jnp.zeros((1, h_dim), jnp.float32)
    return (wq, bq, wk, bk, wv, bv, wp, bp,
            w1, b1, w2, b2, g1, be1, g2, be2)


if __name__ == "__main__":
    # Small but lane-dense shapes: C=128 (multiple of 128), 4 heads -> D=32,
    # T=16 with q_tile=8 so the (B, T//TQ) grid exercises the per-batch K/V scratch reuse.
    B, T, C, n_heads = 2, 16, 128, 4
    key = jax.random.PRNGKey(0)
    kx, kp = jax.random.split(key)
    x = jax.random.normal(kx, (B, T, C), jnp.float32)
    params = make_params(kp, C)

    out = block_forward(x, params, n_heads, q_tile=8)
    out = jax.block_until_ready(out)

    ref = block_reference(x, params, n_heads)
    assert out.shape == (B, T, C)
    # bf16 MXU operands -> looser tolerance vs f32 reference.
    assert jnp.allclose(out, ref, atol=2e-2, rtol=2e-2), "mismatch vs JAX reference"

    print("KERNEL_OK")
</pallas_src>

<mosaic_0001>
module attributes {stable_mosaic.version = 11 : i64} {
  func.func @block_kernel(%arg0: i32, %arg1: i32, %arg2: memref<1x8x128xf32, #tpu.memory_space<vmem>>, %arg3: memref<2x16x128xbf16, #tpu.memory_space<any>>, %arg4: memref<128x384xbf16, #tpu.memory_space<vmem>>, %arg5: memref<1x384xf32, #tpu.memory_space<vmem>>, %arg6: memref<128x128xbf16, #tpu.memory_space<vmem>>, %arg7: memref<1x128xf32, #tpu.memory_space<vmem>>, %arg8: memref<128x512xbf16, #tpu.memory_space<vmem>>, %arg9: memref<1x512xf32, #tpu.memory_space<vmem>>, %arg10: memref<512x128xbf16, #tpu.memory_space<vmem>>, %arg11: memref<1x128xf32, #tpu.memory_space<vmem>>, %arg12: memref<1x128xf32, #tpu.memory_space<vmem>>, %arg13: memref<1x128xf32, #tpu.memory_space<vmem>>, %arg14: memref<1x128xf32, #tpu.memory_space<vmem>>, %arg15: memref<1x128xf32, #tpu.memory_space<vmem>>, %arg16: memref<1x8x128xf32, #tpu.memory_space<vmem>>, %arg17: memref<16x128xbf16, #tpu.memory_space<vmem>>, %arg18: memref<4x16x32xbf16, #tpu.memory_space<vmem>>, %arg19: memref<4x16x32xbf16, #tpu.memory_space<vmem>>, %arg20: memref<4x8x32xbf16, #tpu.memory_space<vmem>>, %arg21: memref<!tpu.dma_semaphore, #tpu.memory_space<semaphore_mem>>) attributes {dimension_semantics = [#tpu.dimension_semantics<parallel>, #tpu.dimension_semantics<arbitrary>], iteration_bounds = array<i64: 2, 2>, scalar_prefetch = 0 : i64, scratch_operands = 5 : i64, tpu.core_type = #tpu.core_type<tc>, window_params = [{transform_indices = @transform_0, window_bounds = array<i64: 1, 8, 128>}, {}, {pipeline_mode = #tpu.pipeline_mode<synchronous>, transform_indices = @transform_2, window_bounds = array<i64: 128, 384>}, {pipeline_mode = #tpu.pipeline_mode<synchronous>, transform_indices = @transform_3, window_bounds = array<i64: 1, 384>}, {pipeline_mode = #tpu.pipeline_mode<synchronous>, transform_indices = @transform_4, window_bounds = array<i64: 128, 128>}, {pipeline_mode = #tpu.pipeline_mode<synchronous>, transform_indices = @transform_5, window_bounds = array<i64: 1, 128>}, {pipeline_mode = #tpu.pipeline_mode<synchronous>, transform_indices = @transform_6, window_bounds = array<i64: 128, 512>}, {pipeline_mode = #tpu.pipeline_mode<synchronous>, transform_indices = @transform_7, window_bounds = array<i64: 1, 512>}, {pipeline_mode = #tpu.pipeline_mode<synchronous>, transform_indices = @transform_8, window_bounds = array<i64: 512, 128>}, {pipeline_mode = #tpu.pipeline_mode<synchronous>, transform_indices = @transform_9, window_bounds = array<i64: 1, 128>}, {pipeline_mode = #tpu.pipeline_mode<synchronous>, transform_indices = @transform_10, window_bounds = array<i64: 1, 128>}, {pipeline_mode = #tpu.pipeline_mode<synchronous>, transform_indices = @transform_11, window_bounds = array<i64: 1, 128>}, {pipeline_mode = #tpu.pipeline_mode<synchronous>, transform_indices = @transform_12, window_bounds = array<i64: 1, 128>}, {pipeline_mode = #tpu.pipeline_mode<synchronous>, transform_indices = @transform_13, window_bounds = array<i64: 1, 128>}, {transform_indices = @transform_14, window_bounds = array<i64: 1, 8, 128>}]} {
    %c0 = arith.constant 0 : index
    %c0_0 = arith.constant 0 : index
    %c0_1 = arith.constant 0 : index
    %0 = vector.load %arg2[%c0, %c0_0, %c0_1] : memref<1x8x128xf32, #tpu.memory_space<vmem>>, vector<1x8x128xf32>
    %1 = vector.shape_cast %0 : vector<1x8x128xf32> to vector<8x128xf32>
    %c0_i32 = arith.constant 0 : i32
    %2 = arith.cmpi eq, %arg1, %c0_i32 : i32
    %3 = arith.extui %2 : i1 to i32
    %c0_i32_2 = arith.constant 0 : i32
    %4 = arith.cmpi ne, %3, %c0_i32_2 : i32
    scf.if %4 {
      %c0_i32_58 = arith.constant 0 : i32
      %c0_i32_59 = arith.constant 0 : i32
      %134 = tpu.memref_slice %arg3[%arg0, %c0_i32_58, %c0_i32_59] : memref<2x16x128xbf16, #tpu.memory_space<any>> -> memref<1x16x128xbf16, #tpu.memory_space<any>>
      %135 = tpu.memref_squeeze %134 : memref<1x16x128xbf16, #tpu.memory_space<any>> -> memref<16x128xbf16, #tpu.memory_space<any>>
      tpu.enqueue_dma source(%135 : memref<16x128xbf16, #tpu.memory_space<any>>) target(%arg17 : memref<16x128xbf16, #tpu.memory_space<vmem>>) target_semaphore(%arg21 : memref<!tpu.dma_semaphore, #tpu.memory_space<semaphore_mem>>)
      %c0_i32_60 = arith.constant 0 : i32
      %c0_i32_61 = arith.constant 0 : i32
      %136 = tpu.memref_slice %arg3[%arg0, %c0_i32_60, %c0_i32_61] : memref<2x16x128xbf16, #tpu.memory_space<any>> -> memref<1x16x128xbf16, #tpu.memory_space<any>>
      %137 = tpu.memref_squeeze %136 : memref<1x16x128xbf16, #tpu.memory_space<any>> -> memref<16x128xbf16, #tpu.memory_space<any>>
      tpu.wait_dma2 semaphore(%arg21 : memref<!tpu.dma_semaphore, #tpu.memory_space<semaphore_mem>>) src(%137 : memref<16x128xbf16, #tpu.memory_space<any>>) dst(%arg17 : memref<16x128xbf16, #tpu.memory_space<vmem>>)
      %c0_62 = arith.constant 0 : index
      %c0_63 = arith.constant 0 : index
      %138 = vector.load %arg17[%c0_62, %c0_63] : memref<16x128xbf16, #tpu.memory_space<vmem>>, vector<16x128xbf16>
      %c0_64 = arith.constant 0 : index
      %c128 = arith.constant 128 : index
      %139 = vector.load %arg4[%c0_64, %c128] : memref<128x384xbf16, #tpu.memory_space<vmem>>, vector<128x256xbf16>
      %cst_65 = arith.constant dense<0.000000e+00> : vector<16x256xf32>
      %140 = tpu.matmul %138, %139, %cst_65 {dimension_numbers = #tpu.dot_dimension_numbers<[1], [0], [0], [1], [0, 0, 1, 1], [], []>} : vector<16x128xbf16>, vector<128x256xbf16>, vector<16x256xf32> -> vector<16x256xf32>
      %c0_66 = arith.constant 0 : index
      %c128_67 = arith.constant 128 : index
      %141 = vector.load %arg5[%c0_66, %c128_67] : memref<1x384xf32, #tpu.memory_space<vmem>>, vector<1x256xf32>
      %142 = vector.shape_cast %141 : vector<1x256xf32> to vector<256xf32>
      %143 = vector.shape_cast %142 : vector<256xf32> to vector<1x256xf32>
      %144 = vector.broadcast %143 : vector<1x256xf32> to vector<16x256xf32>
      %145 = arith.addf %140, %144 : vector<16x256xf32>
      %146 = arith.truncf %145 : vector<16x256xf32> to vector<16x256xbf16>
      %147 = vector.extract_strided_slice %146 {offsets = [0, 0], sizes = [16, 32], strides = [1, 1]} : vector<16x256xbf16> to vector<16x32xbf16>
      %c0_68 = arith.constant 0 : index
      %c0_69 = arith.constant 0 : index
      %c0_70 = arith.constant 0 : index
      %148 = vector.load %arg18[%c0_68, %c0_69, %c0_70] : memref<4x16x32xbf16, #tpu.memory_space<vmem>>, vector<1x16x32xbf16>
      %149 = vector.shape_cast %148 : vector<1x16x32xbf16> to vector<16x32xbf16>
      %150 = vector.shape_cast %147 : vector<16x32xbf16> to vector<1x16x32xbf16>
      tpu.vector_store %arg18[%c0_68, %c0_69, %c0_70], %150 {strides = array<i32>} : memref<4x16x32xbf16, #tpu.memory_space<vmem>>, vector<1x16x32xbf16>,
      %151 = vector.extract_strided_slice %146 {offsets = [0, 128], sizes = [16, 32], strides = [1, 1]} : vector<16x256xbf16> to vector<16x32xbf16>
      %c0_71 = arith.constant 0 : index
      %c0_72 = arith.constant 0 : index
      %c0_73 = arith.constant 0 : index
      %152 = vector.load %arg19[%c0_71, %c0_72, %c0_73] : memref<4x16x32xbf16, #tpu.memory_space<vmem>>, vector<1x16x32xbf16>
      %153 = vector.shape_cast %152 : vector<1x16x32xbf16> to vector<16x32xbf16>
      %154 = vector.shape_cast %151 : vector<16x32xbf16> to vector<1x16x32xbf16>
      tpu.vector_store %arg19[%c0_71, %c0_72, %c0_73], %154 {strides = array<i32>} : memref<4x16x32xbf16, #tpu.memory_space<vmem>>, vector<1x16x32xbf16>,
      %155 = vector.extract_strided_slice %146 {offsets = [0, 32], sizes = [16, 32], strides = [1, 1]} : vector<16x256xbf16> to vector<16x32xbf16>
      %c1_74 = arith.constant 1 : index
      %c0_75 = arith.constant 0 : index
      %c0_76 = arith.constant 0 : index
      %156 = vector.load %arg18[%c1_74, %c0_75, %c0_76] : memref<4x16x32xbf16, #tpu.memory_space<vmem>>, vector<1x16x32xbf16>
      %157 = vector.shape_cast %156 : vector<1x16x32xbf16> to vector<16x32xbf16>
      %158 = vector.shape_cast %155 : vector<16x32xbf16> to vector<1x16x32xbf16>
      tpu.vector_store %arg18[%c1_74, %c0_75, %c0_76], %158 {strides = array<i32>} : memref<4x16x32xbf16, #tpu.memory_space<vmem>>, vector<1x16x32xbf16>,
      %159 = vector.extract_strided_slice %146 {offsets = [0, 160], sizes = [16, 32], strides = [1, 1]} : vector<16x256xbf16> to vector<16x32xbf16>
      %c1_77 = arith.constant 1 : index
      %c0_78 = arith.constant 0 : index
      %c0_79 = arith.constant 0 : index
      %160 = vector.load %arg19[%c1_77, %c0_78, %c0_79] : memref<4x16x32xbf16, #tpu.memory_space<vmem>>, vector<1x16x32xbf16>
      %161 = vector.shape_cast %160 : vector<1x16x32xbf16> to vector<16x32xbf16>
      %162 = vector.shape_cast %159 : vector<16x32xbf16> to vector<1x16x32xbf16>
      tpu.vector_store %arg19[%c1_77, %c0_78, %c0_79], %162 {strides = array<i32>} : memref<4x16x32xbf16, #tpu.memory_space<vmem>>, vector<1x16x32xbf16>,
      %163 = vector.extract_strided_slice %146 {offsets = [0, 64], sizes = [16, 32], strides = [1, 1]} : vector<16x256xbf16> to vector<16x32xbf16>
      %c2_80 = arith.constant 2 : index
      %c0_81 = arith.constant 0 : index
      %c0_82 = arith.constant 0 : index
      %164 = vector.load %arg18[%c2_80, %c0_81, %c0_82] : memref<4x16x32xbf16, #tpu.memory_space<vmem>>, vector<1x16x32xbf16>
      %165 = vector.shape_cast %164 : vector<1x16x32xbf16> to vector<16x32xbf16>
      %166 = vector.shape_cast %163 : vector<16x32xbf16> to vector<1x16x32xbf16>
      tpu.vector_store %arg18[%c2_80, %c0_81, %c0_82], %166 {strides = array<i32>} : memref<4x16x32xbf16, #tpu.memory_space<vmem>>, vector<1x16x32xbf16>,
      %167 = vector.extract_strided_slice %146 {offsets = [0, 192], sizes = [16, 32], strides = [1, 1]} : vector<16x256xbf16> to vector<16x32xbf16>
      %c2_83 = arith.constant 2 : index
      %c0_84 = arith.constant 0 : index
      %c0_85 = arith.constant 0 : index
      %168 = vector.load %arg19[%c2_83, %c0_84, %c0_85] : memref<4x16x32xbf16, #tpu.memory_space<vmem>>, vector<1x16x32xbf16>
      %169 = vector.shape_cast %168 : vector<1x16x32xbf16> to vector<16x32xbf16>
      %170 = vector.shape_cast %167 : vector<16x32xbf16> to vector<1x16x32xbf16>
      tpu.vector_store %arg19[%c2_83, %c0_84, %c0_85], %170 {strides = array<i32>} : memref<4x16x32xbf16, #tpu.memory_space<vmem>>, vector<1x16x32xbf16>,
      %171 = vector.extract_strided_slice %146 {offsets = [0, 96], sizes = [16, 32], strides = [1, 1]} : vector<16x256xbf16> to vector<16x32xbf16>
      %c3_86 = arith.constant 3 : index
      %c0_87 = arith.constant 0 : index
      %c0_88 = arith.constant 0 : index
      %172 = vector.load %arg18[%c3_86, %c0_87, %c0_88] : memref<4x16x32xbf16, #tpu.memory_space<vmem>>, vector<1x16x32xbf16>
      %173 = vector.shape_cast %172 : vector<1x16x32xbf16> to vector<16x32xbf16>
      %174 = vector.shape_cast %171 : vector<16x32xbf16> to vector<1x16x32xbf16>
      tpu.vector_store %arg18[%c3_86, %c0_87, %c0_88], %174 {strides = array<i32>} : memref<4x16x32xbf16, #tpu.memory_space<vmem>>, vector<1x16x32xbf16>,
      %175 = vector.extract_strided_slice %146 {offsets = [0, 224], sizes = [16, 32], strides = [1, 1]} : vector<16x256xbf16> to vector<16x32xbf16>
      %c3_89 = arith.constant 3 : index
      %c0_90 = arith.constant 0 : index
      %c0_91 = arith.constant 0 : index
      %176 = vector.load %arg19[%c3_89, %c0_90, %c0_91] : memref<4x16x32xbf16, #tpu.memory_space<vmem>>, vector<1x16x32xbf16>
      %177 = vector.shape_cast %176 : vector<1x16x32xbf16> to vector<16x32xbf16>
      %178 = vector.shape_cast %175 : vector<16x32xbf16> to vector<1x16x32xbf16>
      tpu.vector_store %arg19[%c3_89, %c0_90, %c0_91], %178 {strides = array<i32>} : memref<4x16x32xbf16, #tpu.memory_space<vmem>>, vector<1x16x32xbf16>,
    } else {
    }
    %5 = arith.truncf %1 : vector<8x128xf32> to vector<8x128xbf16>
    %c0_3 = arith.constant 0 : index
    %c0_4 = arith.constant 0 : index
    %6 = vector.load %arg4[%c0_3, %c0_4] : memref<128x384xbf16, #tpu.memory_space<vmem>>, vector<128x128xbf16>
    %cst = arith.constant dense<0.000000e+00> : vector<8x128xf32>
    %7 = tpu.matmul %5, %6, %cst {dimension_numbers = #tpu.dot_dimension_numbers<[1], [0], [0], [1], [0, 0, 1, 1], [], []>} : vector<8x128xbf16>, vector<128x128xbf16>, vector<8x128xf32> -> vector<8x128xf32>
    %c0_5 = arith.constant 0 : index
    %c0_6 = arith.constant 0 : index
    %8 = vector.load %arg5[%c0_5, %c0_6] : memref<1x384xf32, #tpu.memory_space<vmem>>, vector<1x128xf32>
    %9 = vector.shape_cast %8 : vector<1x128xf32> to vector<128xf32>
    %10 = vector.shape_cast %9 : vector<128xf32> to vector<1x128xf32>
    %11 = vector.broadcast %10 : vector<1x128xf32> to vector<8x128xf32>
    %12 = arith.addf %7, %11 : vector<8x128xf32>
    %cst_7 = arith.constant 0.176776692 : f32
    %13 = vector.broadcast %cst_7 : f32 to vector<8x128xf32>
    %14 = arith.mulf %12, %13 : vector<8x128xf32>
    %15 = arith.truncf %14 : vector<8x128xf32> to vector<8x128xbf16>
    %16 = vector.extract_strided_slice %15 {offsets = [0, 0], sizes = [8, 32], strides = [1, 1]} : vector<8x128xbf16> to vector<8x32xbf16>
    %c0_8 = arith.constant 0 : index
    %c0_9 = arith.constant 0 : index
    %c0_10 = arith.constant 0 : index
    %17 = vector.load %arg20[%c0_8, %c0_9, %c0_10] : memref<4x8x32xbf16, #tpu.memory_space<vmem>>, vector<1x8x32xbf16>
    %18 = vector.shape_cast %17 : vector<1x8x32xbf16> to vector<8x32xbf16>
    %19 = vector.shape_cast %16 : vector<8x32xbf16> to vector<1x8x32xbf16>
    tpu.vector_store %arg20[%c0_8, %c0_9, %c0_10], %19 {strides = array<i32>} : memref<4x8x32xbf16, #tpu.memory_space<vmem>>, vector<1x8x32xbf16>,
    %20 = vector.extract_strided_slice %15 {offsets = [0, 32], sizes = [8, 32], strides = [1, 1]} : vector<8x128xbf16> to vector<8x32xbf16>
    %c1 = arith.constant 1 : index
    %c0_11 = arith.constant 0 : index
    %c0_12 = arith.constant 0 : index
    %21 = vector.load %arg20[%c1, %c0_11, %c0_12] : memref<4x8x32xbf16, #tpu.memory_space<vmem>>, vector<1x8x32xbf16>
    %22 = vector.shape_cast %21 : vector<1x8x32xbf16> to vector<8x32xbf16>
    %23 = vector.shape_cast %20 : vector<8x32xbf16> to vector<1x8x32xbf16>
    tpu.vector_store %arg20[%c1, %c0_11, %c0_12], %23 {strides = array<i32>} : memref<4x8x32xbf16, #tpu.memory_space<vmem>>, vector<1x8x32xbf16>,
    %24 = vector.extract_strided_slice %15 {offsets = [0, 64], sizes = [8, 32], strides = [1, 1]} : vector<8x128xbf16> to vector<8x32xbf16>
    %c2 = arith.constant 2 : index
    %c0_13 = arith.constant 0 : index
    %c0_14 = arith.constant 0 : index
    %25 = vector.load %arg20[%c2, %c0_13, %c0_14] : memref<4x8x32xbf16, #tpu.memory_space<vmem>>, vector<1x8x32xbf16>
    %26 = vector.shape_cast %25 : vector<1x8x32xbf16> to vector<8x32xbf16>
    %27 = vector.shape_cast %24 : vector<8x32xbf16> to vector<1x8x32xbf16>
    tpu.vector_store %arg20[%c2, %c0_13, %c0_14], %27 {strides = array<i32>} : memref<4x8x32xbf16, #tpu.memory_space<vmem>>, vector<1x8x32xbf16>,
    %28 = vector.extract_strided_slice %15 {offsets = [0, 96], sizes = [8, 32], strides = [1, 1]} : vector<8x128xbf16> to vector<8x32xbf16>
    %c3 = arith.constant 3 : index
    %c0_15 = arith.constant 0 : index
    %c0_16 = arith.constant 0 : index
    %29 = vector.load %arg20[%c3, %c0_15, %c0_16] : memref<4x8x32xbf16, #tpu.memory_space<vmem>>, vector<1x8x32xbf16>
    %30 = vector.shape_cast %29 : vector<1x8x32xbf16> to vector<8x32xbf16>
    %31 = vector.shape_cast %28 : vector<8x32xbf16> to vector<1x8x32xbf16>
    tpu.vector_store %arg20[%c3, %c0_15, %c0_16], %31 {strides = array<i32>} : memref<4x8x32xbf16, #tpu.memory_space<vmem>>, vector<1x8x32xbf16>,
    %c8_i32 = arith.constant 8 : i32
    %32 = arith.muli %arg1, %c8_i32 : i32
    %33 = tpu.iota {dimensions = array<i32: 0>} : vector<8x16xi32>
    %34 = vector.broadcast %32 : i32 to vector<8x16xi32>
    %35 = arith.addi %33, %34 : vector<8x16xi32>
    %36 = tpu.iota {dimensions = array<i32: 1>} : vector<8x16xi32>
    %37 = arith.cmpi sle, %36, %35 : vector<8x16xi32>
    %cst_17 = arith.constant 0.000000e+00 : f32
    %cst_18 = arith.constant -1.000000e+30 : f32
    %38 = vector.broadcast %cst_17 : f32 to vector<8x16xf32>
    %39 = vector.broadcast %cst_18 : f32 to vector<8x16xf32>
    %40 = arith.select %37, %38, %39 : vector<8x16xi1>, vector<8x16xf32>
    %cst_19 = arith.constant 0.000000e+00 : f32
    %41 = vector.broadcast %cst_19 : f32 to vector<8x128xf32>
    %c0_i32_20 = arith.constant 0 : i32
    %c4_i32 = arith.constant 4 : i32
    %42 = arith.addi %c0_i32_20, %c4_i32 : i32
    %c1_i32 = arith.constant 1 : i32
    %43 = scf.for %arg22 = %c0_i32_20 to %42 step %c1_i32 iter_args(%arg23 = %41) -> (vector<8x128xf32>)  : i32 {
      %134 = arith.index_cast %arg22 : i32 to index
      %c0_58 = arith.constant 0 : index
      %c0_59 = arith.constant 0 : index
      %135 = vector.load %arg20[%134, %c0_58, %c0_59] : memref<4x8x32xbf16, #tpu.memory_space<vmem>>, vector<1x8x32xbf16>
      %136 = vector.shape_cast %135 : vector<1x8x32xbf16> to vector<8x32xbf16>
      %137 = arith.index_cast %arg22 : i32 to index
      %c0_60 = arith.constant 0 : index
      %c0_61 = arith.constant 0 : index
      %138 = vector.load %arg18[%137, %c0_60, %c0_61] : memref<4x16x32xbf16, #tpu.memory_space<vmem>>, vector<1x16x32xbf16>
      %139 = vector.shape_cast %138 : vector<1x16x32xbf16> to vector<16x32xbf16>
      %140 = arith.index_cast %arg22 : i32 to index
      %c0_62 = arith.constant 0 : index
      %c0_63 = arith.constant 0 : index
      %141 = vector.load %arg19[%140, %c0_62, %c0_63] : memref<4x16x32xbf16, #tpu.memory_space<vmem>>, vector<1x16x32xbf16>
      %142 = vector.shape_cast %141 : vector<1x16x32xbf16> to vector<16x32xbf16>
      %cst_64 = arith.constant dense<0.000000e+00> : vector<8x16xf32>
      %143 = tpu.matmul %136, %139, %cst_64 {dimension_numbers = #tpu.dot_dimension_numbers<[1], [1], [0], [0], [0, 0, 1, 0], [], []>} : vector<8x32xbf16>, vector<16x32xbf16>, vector<8x16xf32> -> vector<8x16xf32>
      %144 = arith.addf %143, %40 : vector<8x16xf32>
      %cst_65 = arith.constant dense<0xFF800000> : vector<8xf32>
      %145 = vector.multi_reduction <maximumf>, %144, %cst_65 [1] : vector<8x16xf32> to vector<8xf32>
      %146 = vector.shape_cast %145 : vector<8xf32> to vector<8x1xf32>
      %147 = vector.broadcast %146 : vector<8x1xf32> to vector<8x16xf32>
      %148 = arith.subf %144, %147 : vector<8x16xf32>
      %149 = math.exp %148 : vector<8x16xf32>
      %cst_66 = arith.constant dense<0.000000e+00> : vector<8xf32>
      %150 = vector.multi_reduction <add>, %149, %cst_66 [1] : vector<8x16xf32> to vector<8xf32>
      %151 = vector.shape_cast %150 : vector<8xf32> to vector<8x1xf32>
      %152 = vector.broadcast %151 : vector<8x1xf32> to vector<8x16xf32>
      %153 = arith.divf %149, %152 : vector<8x16xf32>
      %154 = arith.truncf %153 : vector<8x16xf32> to vector<8x16xbf16>
      %cst_67 = arith.constant dense<0.000000e+00> : vector<8x32xf32>
      %155 = tpu.matmul %154, %142, %cst_67 {dimension_numbers = #tpu.dot_dimension_numbers<[1], [0], [0], [1], [0, 0, 1, 1], [], []>} : vector<8x16xbf16>, vector<16x32xbf16>, vector<8x32xf32> -> vector<8x32xf32>
      %c32_i32 = arith.constant 32 : i32
      %156 = arith.muli %arg22, %c32_i32 : i32
      %157 = tpu.assume_multiple %156, 32 : i32
      %158 = arith.index_cast %157 : i32 to index
      %c0_68 = arith.constant 0 : index
      %159 = vector.load %arg6[%158, %c0_68] : memref<128x128xbf16, #tpu.memory_space<vmem>>, vector<32x128xbf16>
      %160 = arith.truncf %155 : vector<8x32xf32> to vector<8x32xbf16>
      %cst_69 = arith.constant dense<0.000000e+00> : vector<8x128xf32>
      %161 = tpu.matmul %160, %159, %cst_69 {dimension_numbers = #tpu.dot_dimension_numbers<[1], [0], [0], [1], [0, 0, 1, 1], [], []>} : vector<8x32xbf16>, vector<32x128xbf16>, vector<8x128xf32> -> vector<8x128xf32>
      %162 = arith.addf %arg23, %161 : vector<8x128xf32>
      scf.yield %162 : vector<8x128xf32>
    }
    %c4_i32_21 = arith.constant 4 : i32
    %c0_22 = arith.constant 0 : index
    %c0_23 = arith.constant 0 : index
    %44 = vector.load %arg7[%c0_22, %c0_23] : memref<1x128xf32, #tpu.memory_space<vmem>>, vector<1x128xf32>
    %45 = vector.shape_cast %44 : vector<1x128xf32> to vector<128xf32>
    %46 = vector.shape_cast %45 : vector<128xf32> to vector<1x128xf32>
    %47 = vector.broadcast %46 : vector<1x128xf32> to vector<8x128xf32>
    %48 = arith.addf %43, %47 : vector<8x128xf32>
    %49 = arith.addf %1, %48 : vector<8x128xf32>
    %cst_24 = arith.constant dense<0.000000e+00> : vector<8xf32>
    %50 = vector.multi_reduction <add>, %49, %cst_24 [1] : vector<8x128xf32> to vector<8xf32>
    %51 = vector.shape_cast %50 : vector<8xf32> to vector<8x1xf32>
    %cst_25 = arith.constant 1.280000e+02 : f32
    %52 = vector.broadcast %cst_25 : f32 to vector<8x1xf32>
    %53 = arith.divf %51, %52 : vector<8x1xf32>
    %54 = vector.broadcast %53 : vector<8x1xf32> to vector<8x128xf32>
    %55 = arith.subf %49, %54 : vector<8x128xf32>
    %56 = arith.mulf %55, %55 : vector<8x128xf32>
    %cst_26 = arith.constant dense<0.000000e+00> : vector<8xf32>
    %57 = vector.multi_reduction <add>, %56, %cst_26 [1] : vector<8x128xf32> to vector<8xf32>
    %58 = vector.shape_cast %57 : vector<8xf32> to vector<8x1xf32>
    %cst_27 = arith.constant 1.280000e+02 : f32
    %59 = vector.broadcast %cst_27 : f32 to vector<8x1xf32>
    %60 = arith.divf %58, %59 : vector<8x1xf32>
    %61 = vector.broadcast %53 : vector<8x1xf32> to vector<8x128xf32>
    %62 = arith.subf %49, %61 : vector<8x128xf32>
    %cst_28 = arith.constant 9.99999974E-6 : f32
    %63 = vector.broadcast %cst_28 : f32 to vector<8x1xf32>
    %64 = arith.addf %60, %63 : vector<8x1xf32>
    %65 = math.rsqrt %64 : vector<8x1xf32>
    %66 = vector.broadcast %65 : vector<8x1xf32> to vector<8x128xf32>
    %67 = arith.mulf %62, %66 : vector<8x128xf32>
    %c0_29 = arith.constant 0 : index
    %c0_30 = arith.constant 0 : index
    %68 = vector.load %arg12[%c0_29, %c0_30] : memref<1x128xf32, #tpu.memory_space<vmem>>, vector<1x128xf32>
    %69 = vector.shape_cast %68 : vector<1x128xf32> to vector<128xf32>
    %70 = vector.shape_cast %69 : vector<128xf32> to vector<1x128xf32>
    %71 = vector.broadcast %70 : vector<1x128xf32> to vector<8x128xf32>
    %72 = arith.mulf %67, %71 : vector<8x128xf32>
    %c0_31 = arith.constant 0 : index
    %c0_32 = arith.constant 0 : index
    %73 = vector.load %arg13[%c0_31, %c0_32] : memref<1x128xf32, #tpu.memory_space<vmem>>, vector<1x128xf32>
    %74 = vector.shape_cast %73 : vector<1x128xf32> to vector<128xf32>
    %75 = vector.shape_cast %74 : vector<128xf32> to vector<1x128xf32>
    %76 = vector.broadcast %75 : vector<1x128xf32> to vector<8x128xf32>
    %77 = arith.addf %72, %76 : vector<8x128xf32>
    %78 = arith.truncf %77 : vector<8x128xf32> to vector<8x128xbf16>
    %c0_33 = arith.constant 0 : index
    %c0_34 = arith.constant 0 : index
    %79 = vector.load %arg8[%c0_33, %c0_34] : memref<128x512xbf16, #tpu.memory_space<vmem>>, vector<128x512xbf16>
    %cst_35 = arith.constant dense<0.000000e+00> : vector<8x512xf32>
    %80 = tpu.matmul %78, %79, %cst_35 {dimension_numbers = #tpu.dot_dimension_numbers<[1], [0], [0], [1], [0, 0, 1, 1], [], []>} : vector<8x128xbf16>, vector<128x512xbf16>, vector<8x512xf32> -> vector<8x512xf32>
    %c0_36 = arith.constant 0 : index
    %c0_37 = arith.constant 0 : index
    %81 = vector.load %arg9[%c0_36, %c0_37] : memref<1x512xf32, #tpu.memory_space<vmem>>, vector<1x512xf32>
    %82 = vector.shape_cast %81 : vector<1x512xf32> to vector<512xf32>
    %83 = vector.shape_cast %82 : vector<512xf32> to vector<1x512xf32>
    %84 = vector.broadcast %83 : vector<1x512xf32> to vector<8x512xf32>
    %85 = arith.addf %80, %84 : vector<8x512xf32>
    %cst_38 = arith.constant 5.000000e-01 : f32
    %86 = vector.broadcast %cst_38 : f32 to vector<8x512xf32>
    %87 = arith.mulf %86, %85 : vector<8x512xf32>
    %cst_39 = arith.constant 0.707106769 : f32
    %88 = vector.broadcast %cst_39 : f32 to vector<8x512xf32>
    %89 = arith.mulf %85, %88 : vector<8x512xf32>
    %90 = math.erf %89 : vector<8x512xf32>
    %cst_40 = arith.constant 1.000000e+00 : f32
    %91 = vector.broadcast %cst_40 : f32 to vector<8x512xf32>
    %92 = arith.addf %91, %90 : vector<8x512xf32>
    %93 = arith.mulf %87, %92 : vector<8x512xf32>
    %94 = arith.truncf %93 : vector<8x512xf32> to vector<8x512xbf16>
    %c0_41 = arith.constant 0 : index
    %c0_42 = arith.constant 0 : index
    %95 = vector.load %arg10[%c0_41, %c0_42] : memref<512x128xbf16, #tpu.memory_space<vmem>>, vector<512x128xbf16>
    %cst_43 = arith.constant dense<0.000000e+00> : vector<8x128xf32>
    %96 = tpu.matmul %94, %95, %cst_43 {dimension_numbers = #tpu.dot_dimension_numbers<[1], [0], [0], [1], [0, 0, 1, 1], [], []>} : vector<8x512xbf16>, vector<512x128xbf16>, vector<8x128xf32> -> vector<8x128xf32>
    %c0_44 = arith.constant 0 : index
    %c0_45 = arith.constant 0 : index
    %97 = vector.load %arg11[%c0_44, %c0_45] : memref<1x128xf32, #tpu.memory_space<vmem>>, vector<1x128xf32>
    %98 = vector.shape_cast %97 : vector<1x128xf32> to vector<128xf32>
    %99 = vector.shape_cast %98 : vector<128xf32> to vector<1x128xf32>
    %100 = vector.broadcast %99 : vector<1x128xf32> to vector<8x128xf32>
    %101 = arith.addf %96, %100 : vector<8x128xf32>
    %102 = arith.addf %77, %101 : vector<8x128xf32>
    %cst_46 = arith.constant dense<0.000000e+00> : vector<8xf32>
    %103 = vector.multi_reduction <add>, %102, %cst_46 [1] : vector<8x128xf32> to vector<8xf32>
    %104 = vector.shape_cast %103 : vector<8xf32> to vector<8x1xf32>
    %cst_47 = arith.constant 1.280000e+02 : f32
    %105 = vector.broadcast %cst_47 : f32 to vector<8x1xf32>
    %106 = arith.divf %104, %105 : vector<8x1xf32>
    %107 = vector.broadcast %106 : vector<8x1xf32> to vector<8x128xf32>
    %108 = arith.subf %102, %107 : vector<8x128xf32>
    %109 = arith.mulf %108, %108 : vector<8x128xf32>
    %cst_48 = arith.constant dense<0.000000e+00> : vector<8xf32>
    %110 = vector.multi_reduction <add>, %109, %cst_48 [1] : vector<8x128xf32> to vector<8xf32>
    %111 = vector.shape_cast %110 : vector<8xf32> to vector<8x1xf32>
    %cst_49 = arith.constant 1.280000e+02 : f32
    %112 = vector.broadcast %cst_49 : f32 to vector<8x1xf32>
    %113 = arith.divf %111, %112 : vector<8x1xf32>
    %114 = vector.broadcast %106 : vector<8x1xf32> to vector<8x128xf32>
    %115 = arith.subf %102, %114 : vector<8x128xf32>
    %cst_50 = arith.constant 9.99999974E-6 : f32
    %116 = vector.broadcast %cst_50 : f32 to vector<8x1xf32>
    %117 = arith.addf %113, %116 : vector<8x1xf32>
    %118 = math.rsqrt %117 : vector<8x1xf32>
    %119 = vector.broadcast %118 : vector<8x1xf32> to vector<8x128xf32>
    %120 = arith.mulf %115, %119 : vector<8x128xf32>
    %c0_51 = arith.constant 0 : index
    %c0_52 = arith.constant 0 : index
    %121 = vector.load %arg14[%c0_51, %c0_52] : memref<1x128xf32, #tpu.memory_space<vmem>>, vector<1x128xf32>
    %122 = vector.shape_cast %121 : vector<1x128xf32> to vector<128xf32>
    %123 = vector.shape_cast %122 : vector<128xf32> to vector<1x128xf32>
    %124 = vector.broadcast %123 : vector<1x128xf32> to vector<8x128xf32>
    %125 = arith.mulf %120, %124 : vector<8x128xf32>
    %c0_53 = arith.constant 0 : index
    %c0_54 = arith.constant 0 : index
    %126 = vector.load %arg15[%c0_53, %c0_54] : memref<1x128xf32, #tpu.memory_space<vmem>>, vector<1x128xf32>
    %127 = vector.shape_cast %126 : vector<1x128xf32> to vector<128xf32>
    %128 = vector.shape_cast %127 : vector<128xf32> to vector<1x128xf32>
    %129 = vector.broadcast %128 : vector<1x128xf32> to vector<8x128xf32>
    %130 = arith.addf %125, %129 : vector<8x128xf32>
    %c0_55 = arith.constant 0 : index
    %c0_56 = arith.constant 0 : index
    %c0_57 = arith.constant 0 : index
    %131 = vector.load %arg16[%c0_55, %c0_56, %c0_57] : memref<1x8x128xf32, #tpu.memory_space<vmem>>, vector<1x8x128xf32>
    %132 = vector.shape_cast %131 : vector<1x8x128xf32> to vector<8x128xf32>
    %133 = vector.shape_cast %130 : vector<8x128xf32> to vector<1x8x128xf32>
    tpu.vector_store %arg16[%c0_55, %c0_56, %c0_57], %133 {strides = array<i32>} : memref<1x8x128xf32, #tpu.memory_space<vmem>>, vector<1x8x128xf32>,
    return
  }
  func.func @transform_0(%arg0: i32, %arg1: i32) -> (i32, i32, i32) {
    %c0_i32 = arith.constant 0 : i32
    %c0_i32_0 = arith.constant 0 : i32
    return %arg0, %arg1, %c0_i32 : i32, i32, i32
  }
  func.func @transform_2(%arg0: i32, %arg1: i32) -> (i32, i32) {
    %c0_i32 = arith.constant 0 : i32
    %c0_i32_0 = arith.constant 0 : i32
    %c0_i32_1 = arith.constant 0 : i32
    return %c0_i32, %c0_i32_0 : i32, i32
  }
  func.func @transform_3(%arg0: i32, %arg1: i32) -> (i32, i32) {
    %c0_i32 = arith.constant 0 : i32
    %c0_i32_0 = arith.constant 0 : i32
    %c0_i32_1 = arith.constant 0 : i32
    return %c0_i32, %c0_i32_0 : i32, i32
  }
  func.func @transform_4(%arg0: i32, %arg1: i32) -> (i32, i32) {
    %c0_i32 = arith.constant 0 : i32
    %c0_i32_0 = arith.constant 0 : i32
    %c0_i32_1 = arith.constant 0 : i32
    return %c0_i32, %c0_i32_0 : i32, i32
  }
  func.func @transform_5(%arg0: i32, %arg1: i32) -> (i32, i32) {
    %c0_i32 = arith.constant 0 : i32
    %c0_i32_0 = arith.constant 0 : i32
    %c0_i32_1 = arith.constant 0 : i32
    return %c0_i32, %c0_i32_0 : i32, i32
  }
  func.func @transform_6(%arg0: i32, %arg1: i32) -> (i32, i32) {
    %c0_i32 = arith.constant 0 : i32
    %c0_i32_0 = arith.constant 0 : i32
    %c0_i32_1 = arith.constant 0 : i32
    return %c0_i32, %c0_i32_0 : i32, i32
  }
  func.func @transform_7(%arg0: i32, %arg1: i32) -> (i32, i32) {
    %c0_i32 = arith.constant 0 : i32
    %c0_i32_0 = arith.constant 0 : i32
    %c0_i32_1 = arith.constant 0 : i32
    return %c0_i32, %c0_i32_0 : i32, i32
  }
  func.func @transform_8(%arg0: i32, %arg1: i32) -> (i32, i32) {
    %c0_i32 = arith.constant 0 : i32
    %c0_i32_0 = arith.constant 0 : i32
    %c0_i32_1 = arith.constant 0 : i32
    return %c0_i32, %c0_i32_0 : i32, i32
  }
  func.func @transform_9(%arg0: i32, %arg1: i32) -> (i32, i32) {
    %c0_i32 = arith.constant 0 : i32
    %c0_i32_0 = arith.constant 0 : i32
    %c0_i32_1 = arith.constant 0 : i32
    return %c0_i32, %c0_i32_0 : i32, i32
  }
  func.func @transform_10(%arg0: i32, %arg1: i32) -> (i32, i32) {
    %c0_i32 = arith.constant 0 : i32
    %c0_i32_0 = arith.constant 0 : i32
    %c0_i32_1 = arith.constant 0 : i32
    return %c0_i32, %c0_i32_0 : i32, i32
  }
  func.func @transform_11(%arg0: i32, %arg1: i32) -> (i32, i32) {
    %c0_i32 = arith.constant 0 : i32
    %c0_i32_0 = arith.constant 0 : i32
    %c0_i32_1 = arith.constant 0 : i32
    return %c0_i32, %c0_i32_0 : i32, i32
  }
  func.func @transform_12(%arg0: i32, %arg1: i32) -> (i32, i32) {
    %c0_i32 = arith.constant 0 : i32
    %c0_i32_0 = arith.constant 0 : i32
    %c0_i32_1 = arith.constant 0 : i32
    return %c0_i32, %c0_i32_0 : i32, i32
  }
  func.func @transform_13(%arg0: i32, %arg1: i32) -> (i32, i32) {
    %c0_i32 = arith.constant 0 : i32
    %c0_i32_0 = arith.constant 0 : i32
    %c0_i32_1 = arith.constant 0 : i32
    return %c0_i32, %c0_i32_0 : i32, i32
  }
  func.func @transform_14(%arg0: i32, %arg1: i32) -> (i32, i32, i32) {
    %c0_i32 = arith.constant 0 : i32
    %c0_i32_0 = arith.constant 0 : i32
    return %arg0, %arg1, %c0_i32 : i32, i32, i32
  }
}

</mosaic_0001>

<bundles_post_ra>
// kernel: tpu_custom_call.1
= control target key start
LH: loop header
LB: loop body
LE: loop exit
PB: predicated region body
PF: predicated region fallthrough
CT: control target
= control target key end

     0   :  { %s3292_s0 = inlined_call_operand.hbm [shape: f32[2,16,128], index: 0, kind: input, shape index: {}]   ;;  %s3293_s1 = inlined_call_operand.hbm [shape: bf16[2,16,128], index: 1, kind: input, shape index: {}]   ;;  %s3294_s2 = inlined_call_operand.hbm [shape: bf16[128,384], index: 2, kind: input, shape index: {}]   ;;  %s3295_s3 = inlined_call_operand.vmem [shape: f32[1,384], index: 3, kind: input, shape index: {}]   ;;  %s3296_s4 = inlined_call_operand.hbm [shape: bf16[128,128], index: 4, kind: input, shape index: {}]   ;;  %s3297_s5 = inlined_call_operand.vmem [shape: f32[1,128], index: 5, kind: input, shape index: {}]   ;;  %s3298_s6 = inlined_call_operand.hbm [shape: bf16[128,512], index: 6, kind: input, shape index: {}]   ;;  %s3299_s7 = inlined_call_operand.vmem [shape: f32[1,512], index: 7, kind: input, shape index: {}]   ;;  %s3300_s8 = inlined_call_operand.hbm [shape: bf16[512,128], index: 8, kind: input, shape index: {}]   ;;  %s3301_s9 = inlined_call_operand.vmem [shape: f32[1,128], index: 9, kind: input, shape index: {}]   ;;  %s3302_s10 = inlined_call_operand.vmem [shape: f32[1,128], index: 10, kind: input, shape index: {}]   ;;  %s3303_s11 = inlined_call_operand.vmem [shape: f32[1,128], index: 11, kind: input, shape index: {}]   ;;  %s3304_s12 = inlined_call_operand.vmem [shape: f32[1,128], index: 12, kind: input, shape index: {}]   ;;  %s3305_s13 = inlined_call_operand.vmem [shape: f32[1,128], index: 13, kind: input, shape index: {}]   ;;  %s3306_s14 = inlined_call_operand.hbm [shape: f32[2,16,128], index: 14, kind: output, shape index: {}]  }
   0x1   :  { %3313 = sst [smem:[#allocation26_spill]] %s3294_s2 }
   0x2   :  { %3314 = sst [smem:[#allocation27_spill]] %s3295_s3 }
   0x3   :  { %3315 = sst [smem:[#allocation28_spill]] %s3296_s4 }
   0x4   :  { %3316 = sst [smem:[#allocation29_spill]] %s3297_s5 }
   0x5   :  { %3317 = sst [smem:[#allocation30_spill]] %s3298_s6 }
   0x6   :  { %3318 = sst [smem:[#allocation31_spill]] %s3299_s7 }
   0x7   :  { %3319 = sst [smem:[#allocation32_spill]] %s3300_s8 }
   0x8   :  { %3320 = sst [smem:[#allocation33_spill]] %s3301_s9 }
   0x9   :  { %3321 = sst [smem:[#allocation34_spill]] %s3302_s10 }
   0xa   :  { %3322 = sst [smem:[#allocation35_spill]] %s3303_s11 }
   0xb   :  { %3323 = sst [smem:[#allocation36_spill]] %s3304_s12 }
   0xc   :  { %3324 = sst [smem:[#allocation37_spill]] %s3305_s13 }
   0xd   :  { %3325 = sst [smem:[#allocation38_spill]] %s3306_s14 }
   0xe   :  { %19 = vsyncpa [#allocation8], 0 }
   0xf   :  { %21 = vsyncpa [#allocation8 + $0x1], 0 }
  0x10   :  { %22 = vsyncpa [#allocation11], 0 }
  0x11   :  { %23 = vsyncpa [#allocation14], 0 }
  0x12   :  { %24 = vsyncpa [#allocation9], 0 }
  0x13   :  { %26 = vsyncpa [#allocation9 + $0x1], 0  ;;  %s2881_s29 = smov 0   ;;  %s2883_s30 = smov 0  }
  0x14   :  { %s2885_s15 = smov 0   ;;  %s2887_s16 = smov 0  }
  0x15   :  { %s2889_s17 = smov 0   ;;  %s2891_s18 = smov 0  }
  0x16   :  { %s2893_s19 = smov 0   ;;  %s2895_s20 = smov 0  }
  0x17 LB: > { %s3307_s21 = sadd.s32 4294967295, %s2770_s20   ;;  %p1969_p0 = scmp.ge.s32.totalorder %s2770_s20, 1  ;;  %s2770_s20 = sphi %s2895_s20, %s32_s20   ;;  %s2766_s19 = sphi %s2893_s19, %s3362_s19   ;;  %s2762_s18 = sphi %s2891_s18, %s3361_s18   ;;  %s2758_s17 = sphi %s2889_s17, %s3360_s17   ;;  %s2754_s16 = sphi %s2887_s16, %s3359_s16   ;;  %s2750_s15 = sphi %s2885_s15, %s3358_s15   ;;  %s2746_s30 = sphi %s2883_s30, %s3357_s30   ;;  %s2742_s29 = sphi %s2881_s29, %s3356_s29  }
  0x18   : > { %p2925_p1 = scmp.eq.s32.totalorder %s3307_s21, 0  ;;  %p357_p2 = scmp.lt.s32.totalorder %s2770_s20, 5 }
  0x19   : > { %s2780_s24 = smov [#allocation10]   ;;  %s2781_s27 = smov [#allocation13]  }
  0x1a   : > { %s3326_s22 = scalar_select %p2925_p1, 1, 0 }
  0x1b   : > { %p2930_p3 = pnand %p1969_p0, %p357_p2  ;;  %s369_s25 = sshll.u32 %s2780_s24, 4  ;;  %s370_s25 = int_to_ptr.vmem [resolvable:$true] %s369_s25 }
  0x1c   : > { %s401_s28 = sshll.u32 %s2781_s27, 4  ;;  %s3329_s2 = sld [smem:[#allocation26_spill]]  ;;  %s2942_s28 = int_to_ptr.vmem [resolvable:$true] %s401_s28 }
  0x1d   : > { %s3327_s23 = scalar_select %p2930_p3, 1, 0 }
  0x1e   : > { %p2223_p4 = pneg %p2930_p3 }
  0x20   : > { %p2938_p5 = pnand %p2223_p4, %p2925_p1 }
  0x22   : > { %s2488_s13 = scalar_lea.hbm %s3329_s2, 3072  ;;  %p2952_p7 = pneg %p2938_p5 }
  0x23   : > { %p2489_p6 = scmp.ne.s32.totalorder %s3329_s2, %s2488_s13  ;;  %p2495_p10 = scmp.lt.u32.totalorder %s2488_s13, %s3329_s2 }
  0x25   : > { %p2491_p8 = pnand %p2952_p7, %p2489_p6 }
  0x27   : > { %p2492_p9 = pneg %p2491_p8 }
  0x29   : > { %p2497_p11 = pnand %p2495_p10, %p2492_p9 }
  0x2b   : > { %2500 = shalt.err (!%p2497_p11)
}
  0x2c   : > { %s2501_s14 = scalar_lea.vmem %s370_s25, 3072  ;;  %p2509_p2 = scmp.lt.s32.totalorder %s370_s25, %s370_s25 }
  0x2d   : > { %p2502_p12 = scmp.ne.s32.totalorder %s370_s25, %s2501_s14  ;;  %p2510_p4 = scmp.lt.s32.totalorder %s2501_s14, %s2501_s14 }
  0x2f   : > { %p2504_p13 = pnand %p2502_p12, %p2952_p7  ;;  %p2511_p3 = por %p2510_p4, %p2509_p2 }
  0x31   : > { %p2505_p0 = pneg %p2504_p13 }
  0x33   : > { %p2512_p1 = pnand %p2511_p3, %p2505_p0 }
  0x35   : > { %2515 = shalt.err (!%p2512_p1)
}
  0x36   : > { %s2782_s9 = smov 192   ;;  %s2783_s12 = smov 12  }
  0x37   : > { %2226 = dma.hbm_to_vmem [thread:$0]  (!%p2938_p5), %s3329_s2, 3072, %s370_s25, [#allocation11], %s2782_s9, %s2782_s9, %s2783_s12  }
  0x38   : > { %s3331_s6 = sld [smem:[#allocation30_spill]] }
  0x3e   : > { %s2516_s11 = scalar_lea.hbm %s3331_s6, 4096 }
  0x3f   : > { %p2517_p6 = scmp.ne.s32.totalorder %s3331_s6, %s2516_s11  ;;  %p2523_p8 = scmp.lt.u32.totalorder %s2516_s11, %s3331_s6 }
  0x41   : > { %p2519_p3 = pnand %p2517_p6, %p2952_p7 }
  0x43   : > { %p2520_p1 = pneg %p2519_p3 }
  0x45   : > { %p2525_p9 = pnand %p2523_p8, %p2520_p1 }
  0x47   : > { %2528 = shalt.err (!%p2525_p9)
}
  0x48   : > { %s2529_s25 = scalar_lea.vmem %s2942_s28, 4096  ;;  %p2537_p13 = scmp.lt.s32.totalorder %s2942_s28, %s2942_s28 }
  0x49   : > { %p2530_p10 = scmp.ne.s32.totalorder %s2942_s28, %s2529_s25  ;;  %p2538_p0 = scmp.lt.s32.totalorder %s2529_s25, %s2529_s25 }
  0x4b   : > { %p2532_p11 = pnand %p2530_p10, %p2952_p7  ;;  %p2539_p2 = por %p2538_p0, %p2537_p13 }
  0x4d   : > { %p2533_p12 = pneg %p2532_p11 }
  0x4f   : > { %p2540_p4 = pnand %p2539_p2, %p2533_p12 }
  0x51   : > { %2543 = shalt.err (!%p2540_p4)
}
  0x52   : > { %s2784_s5 = smov 256   ;;  %s2785_s3 = smov 16  }
  0x53   : > { %2232 = dma.hbm_to_vmem [thread:$0]  (!%p2938_p5), %s3331_s6, 4096, %s2942_s28, [#allocation14], %s2784_s5, %s2784_s5, %s2785_s3  }
  0x54   : > { %s2786_s9 = smov [#allocation12]   ;;  %s3332_s4 = sld [smem:[#allocation28_spill]] }
  0x55   : > { %s385_s12 = sshll.u32 %s2786_s9, 4  ;;  %s386_s12 = int_to_ptr.vmem [resolvable:$true] %s385_s12 }
  0x5a   : > { %s2544_s21 = scalar_lea.hbm %s3332_s4, 1024 }
  0x5b   : > { %p2545_p6 = scmp.ne.s32.totalorder %s3332_s4, %s2544_s21  ;;  %p2551_p8 = scmp.lt.u32.totalorder %s2544_s21, %s3332_s4 }
  0x5d   : > { %p2547_p3 = pnand %p2545_p6, %p2952_p7 }
  0x5f   : > { %p2548_p1 = pneg %p2547_p3 }
  0x61   : > { %p2553_p9 = pnand %p2551_p8, %p2548_p1 }
  0x63   : > { %2556 = shalt.err (!%p2553_p9)
}
  0x64   : > { %s2557_s28 = scalar_lea.vmem %s386_s12, 1024  ;;  %p2565_p13 = scmp.lt.s32.totalorder %s386_s12, %s386_s12 }
  0x65   : > { %p2558_p10 = scmp.ne.s32.totalorder %s386_s12, %s2557_s28  ;;  %p2566_p0 = scmp.lt.s32.totalorder %s2557_s28, %s2557_s28 }
  0x67   : > { %p2560_p11 = pnand %p2558_p10, %p2952_p7  ;;  %p2567_p2 = por %p2566_p0, %p2565_p13 }
  0x69   : > { %p2561_p12 = pneg %p2560_p11 }
  0x6b   : > { %p2568_p4 = pnand %p2567_p2, %p2561_p12 }
  0x6d   : > { %2571 = shalt.err (!%p2568_p4)
}
  0x6e   : > { %s2787_s5 = smov 64   ;;  %s2788_s3 = smov 4  }
  0x6f   : > { %2229 = dma.hbm_to_vmem [thread:$0]  (!%p2938_p5), %s3332_s4, 1024, %s386_s12, [#allocation11], %s2787_s5, %s2787_s5, %s2788_s3  }
  0x70   : > { %s2789_s11 = smov [#allocation15]   ;;  %s3333_s8 = sld [smem:[#allocation32_spill]] }
  0x71   : > { %s417_s9 = sshll.u32 %s2789_s11, 4  ;;  %s418_s9 = int_to_ptr.vmem [resolvable:$true] %s417_s9 }
  0x76   : > { %s2572_s21 = scalar_lea.hbm %s3333_s8, 4096 }
  0x77   : > { %p2573_p6 = scmp.ne.s32.totalorder %s3333_s8, %s2572_s21  ;;  %p2579_p8 = scmp.lt.u32.totalorder %s2572_s21, %s3333_s8 }
  0x79   : > { %p2575_p3 = pnand %p2573_p6, %p2952_p7 }
  0x7b   : > { %p2576_p1 = pneg %p2575_p3 }
  0x7d   : > { %p2581_p9 = pnand %p2579_p8, %p2576_p1 }
  0x7f   : > { %2584 = shalt.err (!%p2581_p9)
}
  0x80   : > { %s2585_s12 = scalar_lea.vmem %s418_s9, 4096  ;;  %p2593_p13 = scmp.lt.s32.totalorder %s418_s9, %s418_s9 }
  0x81   : > { %p2586_p10 = scmp.ne.s32.totalorder %s418_s9, %s2585_s12  ;;  %p2594_p0 = scmp.lt.s32.totalorder %s2585_s12, %s2585_s12 }
  0x83   : > { %p2588_p11 = pnand %p2586_p10, %p2952_p7  ;;  %p2595_p2 = por %p2594_p0, %p2593_p13 }
  0x85   : > { %p2589_p12 = pneg %p2588_p11 }
  0x87   : > { %p2596_p4 = pnand %p2595_p2, %p2589_p12 }
  0x89   : > { %2599 = shalt.err (!%p2596_p4)
}
  0x8a   : > { %2235 = dma.hbm_to_vmem [thread:$0]  (!%p2938_p5), %s3333_s8, 4096, %s418_s9, [#allocation14], %s2787_s5, %s2787_s5, %s2788_s3  }
  0x8b   : > { %s41_s24 = sadd.s32 1, %s2762_s18  ;;  %s44_s26 = sadd.s32 1, %s2766_s19 }
  0x8c   : > { %p42_p7 = scmp.ge.s32.totalorder %s41_s24, 2  ;;  %s1968_s11 = sadd.s32 4294967294, %s2770_s20  }
  0x8d   : > { %s53_s7 = sadd.s32 1, %s2750_s15  ;;  %p60_p6 = scmp.ne.s32.totalorder %s2750_s15, %s2746_s30 }
  0x8e   : > { %s3364_s24 = smov (%p42_p7, %s41_s24), 0  ;;  %s3366_s26 = smov (!%p42_p7, %s44_s26), %s2766_s19 }
  0x8f   : > { %s49_s13 = ssub.s32 %s2762_s18, %s3364_s24  ;;  %p46_p3 = scmp.ge.s32.totalorder %s3366_s26, 2 }
  0x90   : > { %p66_p1 = scmp.ne.s32.totalorder %s2746_s30, %s2742_s29  ;;  %p61_p8 = scmp.eq.s32.totalorder %s2770_s20, 0 }
  0x91   : > { %s3334_s5 = sadd.s32 4294967295, %s2770_s20   ;;  %s3368_s26 = smov (%p46_p3, %s3366_s26), 0 }
  0x92   : > { %p344_p5 = scmp.eq.s32.totalorder %s3334_s5, 3  ;;  %p3335_p9 = scmp.ne.s32.totalorder %s3326_s22, 0 }
  0x93   : > { %s48_s21 = ssub.s32 %s2766_s19, %s3368_s26  ;;  %p350_p12 = scmp.eq.s32.totalorder %s1968_s11, 3 }
  0x94   : > { %p3047_p10 = por %p3335_p9, %p66_p1  ;;  %p3051_p11 = por %p344_p5, %p60_p6 }
  0x95   : > { %s50_s27 = sor.u32 %s49_s13, %s48_s21  ;;  %p3057_p13 = por %p61_p8, %p60_p6 }
  0x96   : > { %s3337_s9 = scalar_select %p3051_p11, 1, 0 }
  0x97   : > { %p51_p0 = scmp.eq.s32.totalorder %s50_s27, 0  ;;  %p3061_p2 = por %p350_p12, %p66_p1 }
  0x98   : > { %s446_s28 = sand.u32 1, %s2750_s15   ;;  %s1976_s12 = sshll.u32 %s2766_s19, 1 }
  0x99   : > { %s3339_s25 = scalar_select %p3061_p2, 1, 0 }
  0x9a   : > { %s3068_s2 = scalar_select %p51_p0, %s2750_s15, %s53_s7  }
  0x9b   : > { %p2248_p4 = scmp.lt.s32.totalorder %s2770_s20, 4  ;;  %s1975_s10 = sshll.u32 %s446_s28, 3 }
  0x9c   : > { %s455_s5 = sadd.s32 %s2762_s18, %s1976_s12  ;;  %s450_s11 = scalar_lea.vmem [#allocation7], %s1975_s10 }
  0x9d   : > { %s1977_s4 = sshll.u32 %s455_s5, 7  ;;  %s459_s13 = sshll.u32 %s450_s11, 4  ;;  %s3077_s13 = int_to_ptr.vmem [resolvable:$true] %s459_s13 }
  0x9e   : > { %s3075_s8 = scalar_lea.hbm %s3292_s0, %s1977_s4  ;;  %p3081_p7 = pnand %p2248_p4, %p3057_p13 }
  0x9f   : > { %s447_s27 = scalar_lea.sflag [#allocation8], %s446_s28  ;;  %s2600_s12 = scalar_lea.hbm %s3075_s8, 128 }
  0xa0   : > { %p2601_p6 = scmp.ne.s32.totalorder %s3075_s8, %s2600_s12  ;;  %p2602_p3 = pneg %p3081_p7 }
  0xa1   : > { %s2605_s10 = scalar_lea.hbm %s3292_s0, 512  ;;  %p2606_p5 = scmp.lt.u32.totalorder %s3075_s8, %s3292_s0 }
  0xa2   : > { %p2603_p1 = pnand %p2602_p3, %p2601_p6  ;;  %p2607_p9 = scmp.lt.u32.totalorder %s2605_s10, %s2600_s12 }
  0xa3   : > { %p2609_p13 = scmp.lt.u32.totalorder %s2600_s12, %s3075_s8 }
  0xa4   : > { %p2604_p8 = pneg %p2603_p1  ;;  %p2608_p12 = por %p2607_p9, %p2606_p5 }
  0xa6   : > { %p2610_p0 = por %p2609_p13, %p2608_p12 }
  0xa8   : > { %p2611_p4 = pnand %p2610_p0, %p2604_p8 }
  0xaa   : > { %2614 = shalt.err (!%p2611_p4)
}
  0xab   : > { %s2615_s28 = scalar_lea.vmem %s3077_s13, 128  ;;  %s2790_s11 = smov [#allocation7]  }
  0xac   : > { %p2616_p6 = scmp.ne.s32.totalorder %s3077_s13, %s2615_s28  ;;  %s2620_s21 = sshll.u32 %s2790_s11, 4  ;;  %s2621_s21 = int_to_ptr.vmem [resolvable:$false] %s2620_s21 }
  0xad   : > { %s2622_s4 = scalar_lea.vmem %s2621_s21, 256  ;;  %p2623_p11 = scmp.lt.s32.totalorder %s3077_s13, %s2621_s21 }
  0xae   : > { %p2618_p1 = pnand %p2616_p6, %p2602_p3  ;;  %p2624_p5 = scmp.lt.s32.totalorder %s2622_s4, %s2615_s28 }
  0xb0   : > { %p2619_p2 = pneg %p2618_p1  ;;  %p2625_p9 = por %p2624_p5, %p2623_p11 }
  0xb2   : > { %p2626_p12 = pnand %p2625_p9, %p2619_p2 }
  0xb4   : > { %2629 = shalt.err (!%p2626_p12)
}
  0xb5   : > { %2239 = dma.hbm_to_vmem [thread:$0]  (!%p3081_p7), %s3075_s8, 128, %s3077_s13, %s447_s27  }
  0xb6   : > { %p3341_p8 = scmp.ne.s32.totalorder %s3327_s23, 0 }
  0xb7   : > { %s3113_s12 = sand.u32 (!%p3341_p8), 1, %s2746_s30  }
  0xb8   : > { %468 = sbr.rel (%p3341_p8) target bundleno = 3035 (0xbdb), region = 72  ;;  %s1979_s6 = sshll.u32 (!%p3341_p8), %s3113_s12, 3 }
  0xb9   : > { %s471_s10 = scalar_lea.sflag (!%p3341_p8), [#allocation8], %s3113_s12  ;;  %s474_s14 = scalar_lea.vmem (!%p3341_p8), [#allocation7], %s1979_s6 }
  0xbf   : > { %2723 = dma.done.wait (%p3047_p10), %s471_s10, 128  }
  0xc0   : > { %2725 = vsyncadd (%p3047_p10), %s471_s10, 4294967168  ;;  %p3342_p11 = scmp.ne.s32.totalorder %s3326_s22, 0 }
  0xc2   : > { %2727 = dma.done.wait (%p3342_p11), [#allocation11], 4096  }
  0xc3   : > { %2729 = vsyncadd (%p3342_p11), [#allocation11], 4294963200 }
  0xc4   : > { %2731 = dma.done.wait (%p3342_p11), [#allocation14], 8192  }
  0xc5   : > { %2733 = vsyncadd (%p3342_p11), [#allocation14], 4294959104  ;;  %v3129_v0 = vld [vmem:[%s474_s14] sm:$0xff]  ;;  %s3131_s8 = scalar_lea.vmem [#allocation16], %s1979_s6  ;;  %p1985_p2 = scmp.ne.s32.totalorder %s2754_s16, 0 }
  0xc6   : > { %s2101_s23 = sshll.u32 (!%p1985_p2), %s2758_s17, 7  ;;  %s2791_s27 = smov (!%p1985_p2), [#allocation2]  }
  0xc7   : > { %538 = sbr.rel (%p1985_p2) target bundleno = 596 (0x254), region = 96  ;;  %s541_s7 = scalar_lea.hbm (!%p1985_p2), %s3293_s1, %s2101_s23 }
  0xc8   : > { %s549_s5 = sshll.u32 (!%p1985_p2), %s2791_s27, 4  ;;  %s2630_s28 = scalar_lea.hbm (!%p1985_p2), %s541_s7, 128  ;;  %s550_s5 = int_to_ptr.vmem [resolvable:$true] %s549_s5 }
  0xc9   : > { %p2631_p10 = scmp.ne.s32.totalorder (!%p1985_p2), %s541_s7, %s2630_s28  ;;  %s2632_s21 = scalar_lea.hbm (!%p1985_p2), %s3293_s1, 256 }
  0xca   : > { %p2633_p7 = scmp.lt.u32.totalorder (!%p1985_p2), %s541_s7, %s3293_s1  ;;  %p2634_p3 = scmp.lt.u32.totalorder (!%p1985_p2), %s2632_s21, %s2630_s28 }
  0xcb   : > { %p2636_p0 = scmp.lt.u32.totalorder (!%p1985_p2), %s2630_s28, %s541_s7 }
  0xcc   : > { %p2635_p13 = por (!%p1985_p2), %p2634_p3, %p2633_p7 }
  0xce   : > { %p2637_p4 = por %p2636_p0, %p2635_p13 }
  0xd0   : > { %p2638_p6 = pnand %p2637_p4, %p2631_p10 }
  0xd2   : > { %2641 = shalt.err (!%p2638_p6)  }
  0xd3   : > { %s2642_s10 = scalar_lea.vmem %s550_s5, 128  ;;  %p2647_p5 = scmp.lt.s32.totalorder %s550_s5, %s550_s5 }
  0xd4   : > { %p2643_p1 = scmp.ne.s32.totalorder %s550_s5, %s2642_s10  ;;  %p2648_p9 = scmp.lt.s32.totalorder %s2642_s10, %s2642_s10 }
  0xd6   : > { %p2649_p12 = por %p2648_p9, %p2647_p5 }
  0xd8   : > { %p2650_p8 = pnand %p2649_p12, %p2643_p1 }
  0xda   : > { %2653 = shalt.err (!%p2650_p8)  }
  0xdb   : > { %552 = dma.hbm_to_vmem [thread:$0]  %s541_s7, 128, %s550_s5, [#allocation6] }
  0xdc   : > { %2734 = dma.done.wait [#allocation6], 128 }
  0xdd   : > { %2735 = vsyncadd [#allocation6], 4294967168  ;;  %v2792_v1 = vmov 0   ;;  %v2358_v2 = vld [vmem:[#allocation10 + $0x8] ss:$12 sps:$4 sm:$0xff]   ;;  %v557_v18 = vld [vmem:[#allocation2] sm:$0xff]  ;;  %v576_v19 = vlaneseq }
  0xde   : > { %698 = vmatprep.mubr.bf16.mxu0 %v2792_v1  ;;  %v2360_v3 = vld [vmem:[#allocation10 + $0x4] ss:$12 sps:$4 sm:$0xff]   ;;  %666 = vmatprep.subr.bf16.mxu0 %v2358_v2  ;;  %v2361_v4 = vld [vmem:[#allocation10 + $0x20] ss:$12 sps:$4 sm:$0xff]   ;;  %v2363_v5 = vld [vmem:[#allocation10 + $0x1c] ss:$12 sps:$4 sm:$0xff]  }
  0xdf   : > { %667 = vmatpush1.bf16.msra.mxu0 %v2360_v3  ;;  %v2364_v6 = vld [vmem:[#allocation10 + $0x38] ss:$12 sps:$4 sm:$0xff]   ;;  %v2366_v7 = vld [vmem:[#allocation10 + $0x34] ss:$12 sps:$4 sm:$0xff]   ;;  %v2367_v8 = vld [vmem:[#allocation10 + $0x50] ss:$12 sps:$4 sm:$0xff]  }
  0xe0   : > { %668 = vmatprep.subr.bf16.mxu0 %v2361_v4  ;;  %v2369_v9 = vld [vmem:[#allocation10 + $0x4c] ss:$12 sps:$4 sm:$0xff]   ;;  %v2370_v10 = vld [vmem:[#allocation10 + $0x68] ss:$12 sps:$4 sm:$0xff]   ;;  %v2372_v11 = vld [vmem:[#allocation10 + $0x64] ss:$12 sps:$4 sm:$0xff]  }
  0xe1   : > { %v2373_v12 = vld [vmem:[#allocation10 + $0x80] ss:$12 sps:$4 sm:$0xff]   ;;  %v2375_v13 = vld [vmem:[#allocation10 + $0x7c] ss:$12 sps:$4 sm:$0xff]   ;;  %v2376_v14 = vld [vmem:[#allocation10 + $0x98] ss:$12 sps:$4 sm:$0xff]  }
  0xe2   : > { %v2378_v15 = vld [vmem:[#allocation10 + $0x94] ss:$12 sps:$4 sm:$0xff]   ;;  %v2379_v16 = vld [vmem:[#allocation10 + $0xb0] ss:$12 sps:$4 sm:$0xff]   ;;  %v2381_v17 = vld [vmem:[#allocation10 + $0xac] ss:$12 sps:$4 sm:$0xff]  }
  0xe3   : > { %669 = vmatpush1.bf16.msra.mxu0 %v2363_v5  ;;  %v577_v20 = vshrl.u32 %v576_v19, 7  ;;  %s3343_s3 = sld [smem:[#allocation27_spill]]  ;;  %vm711_vm0 = vcmask 261120   ;;  %s2793_s13 = smov 64  }
  0xe4   : > { %670 = vmatprep.subr.bf16.mxu0 %v2364_v6  ;;  %s2794_s7 = smov 96   ;;  %s2795_s27 = smov 32  }
  0xe5   : > { %v578_v21 = vsub.s32 0, %v577_v20  ;;  %v582_v23 = vsub.s32 1, %v577_v20 }
  0xe7   : > { %671 = vmatpush1.bf16.msra.mxu0 %v2366_v7 }
  0xe8   : > { %672 = vmatprep.subr.bf16.mxu0 %v2367_v8 }
  0xe9   : > { %v574_v22 = vld [vmem:[%s3343_s3 + $0x1] sm:$0x3] }
  0xea   : > { %v579_v24 = vrot.slane %v574_v22, %v578_v21  ;;  %v583_v26 = vrot.slane %v574_v22, %v582_v23 }
  0xeb   : > { %673 = vmatpush1.bf16.msra.mxu0 %v2369_v9 }
  0xec   : > { %674 = vmatprep.subr.bf16.mxu0 %v2370_v10 }
  0xef   : > { %675 = vmatpush1.bf16.msra.mxu0 %v2372_v11 }
  0xf0   : > { %676 = vmatprep.subr.bf16.mxu0 %v2373_v12 }
  0xf3   : > { %677 = vmatpush1.bf16.msra.mxu0 %v2375_v13 }
  0xf4   : > { %678 = vmatprep.subr.bf16.mxu0 %v2376_v14 }
  0xf7   : > { %679 = vmatpush1.bf16.msra.mxu0 %v2378_v15 }
  0xf8   : > { %680 = vmatprep.subr.bf16.mxu0 %v2379_v16 }
  0xfb   : > { %681 = vmatpush1.bf16.msra.mxu0 %v2381_v17 }
  0xfe   : > { %699 = vmatmul.mubr.bf16.vlgmr.msra.gmra.mrb[0].mxu0 %v557_v18 }
 0x1d1   : > { %v700_v25 = vpop.f32.mrb[0].mxu0 }
 0x1d2   : > { %v702_v27 = vpop.f32.mrb[1].mxu0  ;;  %v701_v29 = vadd.f32 %v700_v25, %v579_v24 }
 0x1d3   : > { %v704_v28 = vpop.f32.mrb[2].mxu0  ;;  %v703_v32 = vadd.f32 %v702_v27, %v583_v26 }
 0x1d4   : > { %v705_v30 = vadd.f32 %v704_v28, %v579_v24  ;;  %v706_v31 = vpop.f32.mrb[3].mxu0 }
 0x1d5   : > { %v707_v33 = vadd.f32 %v706_v31, %v583_v26 }
 0x1d6   : > { %v709_v34 = vpack.c.bf16 %v705_v30, %v701_v29 }
 0x1d7   : > { %v710_v35 = vpack.c.bf16 %v707_v33, %v703_v32 }
 0x1d8   : > { %712 = vst.msk [vmem:[#allocation3] sm:$0xff] %vm711_vm0, %v709_v34  ;;  %726 = vrot.lane.b32.xlu1 %v709_v34, %s2793_s13  ;;  %715 = vrot.lane.b32.xlu0 %v709_v34, %s2794_s7 }
 0x1d9   : > { %713 = vst.msk [vmem:[#allocation4] sm:$0xff] %vm711_vm0, %v710_v35 }
 0x1dc   : > { %731 = vrot.lane.b32.xlu1 %v710_v35, %s2793_s13  ;;  %721 = vrot.lane.b32.xlu0 %v710_v35, %s2794_s7 }
 0x1e0   : > { %741 = vrot.lane.b32.xlu1 %v710_v35, %s2795_s27  ;;  %736 = vrot.lane.b32.xlu0 %v709_v34, %s2795_s27 }
 0x24a   : > { %v727_v36 = vpop.permute.xlu1 %726  ;;  %v716_v37 = vpop.permute.xlu0 %715 }
 0x24b   : > { %730 = vst.msk [vmem:[#allocation3 + $0x10] sm:$0xff] %vm711_vm0, %v727_v36  ;;  %719 = vst.msk [vmem:[#allocation3 + $0x8] sm:$0xff] %vm711_vm0, %v716_v37 }
 0x24e   : > { %v732_v38 = vpop.permute.xlu1 %731  ;;  %v722_v39 = vpop.permute.xlu0 %721 }
 0x24f   : > { %735 = vst.msk [vmem:[#allocation4 + $0x10] sm:$0xff] %vm711_vm0, %v732_v38  ;;  %725 = vst.msk [vmem:[#allocation4 + $0x8] sm:$0xff] %vm711_vm0, %v722_v39 }
 0x252   : > { %v742_v40 = vpop.permute.xlu1 %741  ;;  %v737_v41 = vpop.permute.xlu0 %736 }
 0x253   : > { %745 = vst.msk [vmem:[#allocation4 + $0x18] sm:$0xff] %vm711_vm0, %v742_v40  ;;  %740 = vst.msk [vmem:[#allocation3 + $0x18] sm:$0xff] %vm711_vm0, %v737_v41 }
 0x254 PF: > { %v2796_v42 = vmov 0.0   ;;  %v2382_v43 = vld [vmem:[#allocation10] ss:$12 sps:$4 sm:$0xff]   ;;  %vm2797_vm1 = vmmov 0   ;;  %v2383_v44 = vld [vmem:[#allocation10 + $0x18] ss:$12 sps:$4 sm:$0xff]   ;;  %v746_v51 = vpack.c.bf16 %v3129_v0, %v3129_v0  ;;  %v881_v52 = vlaneseq }
 0x255   : > { %2163 = vmatprep.subr.bf16.mxu0 %v2796_v42  ;;  %2179 = vmatprep.mubr.msk.bf16.mxu0 %vm2797_vm1, %v2796_v42  ;;  %v2384_v45 = vld [vmem:[#allocation10 + $0x30] ss:$12 sps:$4 sm:$0xff]   ;;  %v2385_v46 = vld [vmem:[#allocation10 + $0x48] ss:$12 sps:$4 sm:$0xff]   ;;  %v2386_v47 = vld [vmem:[#allocation10 + $0x60] ss:$12 sps:$4 sm:$0xff]  }
 0x256   : > { %2164 = vmatpush3.bf16.msra.mxu0 %v2382_v43  ;;  %v2387_v48 = vld [vmem:[#allocation10 + $0x78] ss:$12 sps:$4 sm:$0xff]   ;;  %v2388_v49 = vld [vmem:[#allocation10 + $0x90] ss:$12 sps:$4 sm:$0xff]   ;;  %v2389_v50 = vld [vmem:[#allocation10 + $0xa8] ss:$12 sps:$4 sm:$0xff]  }
 0x257   : > { %2165 = vmatprep.subr.bf16.mxu0 %v2796_v42  ;;  %s2014_s5 = sshll.u32 %s2754_s16, 3  ;;  %v3158_v53 = vshrl.u32 %v881_v52, 7  ;;  %v886_v56 = vand.u32 127, %v881_v52  ;;  %s3344_s11 = sld [smem:[#allocation27_spill]]  ;;  %v2798_v58 = vmov -1e+30  }
 0x258   : > { %v883_v54 = vstv %s2014_s5  ;;  %vm860_vm3 = vcmask 257024   ;;  %s2799_s21 = smov 32   ;;  %s2800_s4 = smov 96   ;;  %v3166_v7 = vmov 0.0  }
 0x259   : > { %v884_v55 = vadd.s32 %v883_v54, %v3158_v53  ;;  %s2801_s6 = smov 64   ;;  %s3168_s10 = smov 0  }
 0x25a   : > { %2166 = vmatpush3.bf16.msra.mxu0 %v2383_v44 }
 0x25b   : > { %2167 = vmatprep.subr.bf16.mxu0 %v2796_v42  ;;  %vm887_vm2 = vcmp.le.s32.totalorder %v886_v56, %v884_v55 }
 0x25c   : > { %v3164_v59 = vsel %vm887_vm2, 0.0, %v2798_v58 }
 0x25d   : > { %v2004_v57 = vld [vmem:[%s3344_s11] ss:$0 sm:$0xff] }
 0x25e   : > { %2168 = vmatpush3.bf16.msra.mxu0 %v2384_v45 }
 0x25f   : > { %2169 = vmatprep.subr.bf16.mxu0 %v2796_v42 }
 0x262   : > { %2170 = vmatpush3.bf16.msra.mxu0 %v2385_v46 }
 0x263   : > { %2171 = vmatprep.subr.bf16.mxu0 %v2796_v42 }
 0x266   : > { %2172 = vmatpush3.bf16.msra.mxu0 %v2386_v47 }
 0x267   : > { %2173 = vmatprep.subr.bf16.mxu0 %v2796_v42 }
 0x26a   : > { %2174 = vmatpush3.bf16.msra.mxu0 %v2387_v48 }
 0x26b   : > { %2175 = vmatprep.subr.bf16.mxu0 %v2796_v42 }
 0x26e   : > { %2176 = vmatpush3.bf16.msra.mxu0 %v2388_v49 }
 0x26f   : > { %2177 = vmatprep.subr.bf16.mxu0 %v2796_v42 }
 0x272   : > { %2178 = vmatpush3.bf16.msra.mxu0 %v2389_v50 }
 0x275   : > { %2180 = vmatmul.mubr.bf16.vlgmr.msra.gmra.mrb[0].mxu0 %v746_v51 }
 0x348   : > { %v852_v60 = vpop.f32.mrb[0].mxu0 }
 0x349   : > { %v853_v61 = vadd.f32 %v2004_v57, %v852_v60  ;;  %v2181_v62 = vpop.f32.mrb[1].mxu0 }
 0x34a   : > { %v855_v63 = vpop.f32.mrb[2].mxu0 }
 0x34b   : > { %v858_v1 = vmul.f32 0.17677669, %v853_v61  ;;  %v2182_v2 = vpop.f32.mrb[3].mxu0 }
 0x34d   : > { %v859_v3 = vpack.c.bf16 %v858_v1, %v858_v1 }
 0x34f   : > { %875 = vrot.lane.b32.xlu1 %v859_v3, %s2799_s21  ;;  %865 = vrot.lane.b32.xlu0 %v859_v3, %s2800_s4  ;;  %861 = vst.msk [vmem:[#allocation5] sm:$0xf] %vm860_vm3, %v859_v3 }
 0x353   : > { %870 = vrot.lane.b32.xlu0 %v859_v3, %s2801_s6 }
 0x3c1   : > { %v876_v4 = vpop.permute.xlu1 %875  ;;  %v866_v5 = vpop.permute.xlu0 %865 }
 0x3c2   : > { %879 = vst.msk [vmem:[#allocation5 + $0xc] sm:$0xf] %vm860_vm3, %v876_v4  ;;  %869 = vst.msk [vmem:[#allocation5 + $0x4] sm:$0xf] %vm860_vm3, %v866_v5 }
 0x3c5   : > { %v871_v6 = vpop.permute.xlu0 %870 }
 0x3c6   : > { %874 = vst.msk [vmem:[#allocation5 + $0x8] sm:$0xf] %vm860_vm3, %v871_v6 }
 0x3c7 LB: >> { %v2802_v8 = vmov 0.0   ;;  %vm2803_vm4 = vmmov 0   ;;  %s2016_s14 = sshll.u32 %s2778_s10, 3  ;;  %vm905_vm5 = vcmask 261120   ;;  %s2020_s23 = sshll.u32 %s2778_s10, 5  ;;  %vm952_vm6 = vcmask 130048   ;;  %s2778_s10 = sphi %s3168_s10, %s894_s10   ;;  %v2774_v7 = vphi %v3166_v7, %v3345_v7  }
 0x3c8   : >> { %2183 = vmatprep.subr.bf16.mxu0 %v2802_v8  ;;  %2185 = vmatprep.mubr.msk.bf16.mxu0 %vm2803_vm4, %v2802_v8  ;;  %s1009_s3 = sshra.s32 %s2020_s23, 3  ;;  %s900_s13 = scalar_lea.vmem [#allocation3], %s2016_s14 }
 0x3c9   : >> { %2189 = vmatprep.subr.bf16.mxu1 %v2802_v8  ;;  %2191 = vmatprep.mubr.msk.bf16.mxu1 %vm2803_vm4, %v2802_v8  ;;  %v901_v9 = vld [vmem:[%s900_s13] sm:$0xff]  ;;  %s2021_s7 = sshll.u32 %s1009_s3, 2  ;;  %s2015_s27 = sshll.u32 %s2778_s10, 2 }
 0x3ca   : >> { %v910_v10 = vsel %vm905_vm5, %v901_v9, 0  ;;  %s3182_s5 = scalar_lea.vmem [#allocation12], %s2021_s7  ;;  %s897_s28 = scalar_lea.vmem [#allocation5], %s2015_s27 }
 0x3cb   : >> { %2184 = vmatpush3.bf16.xpose.msra.mxu0 %v910_v10  ;;  %s903_s22 = scalar_lea.vmem [#allocation4], %s2016_s14  ;;  %v2390_v27 = vld [vmem:[%s3182_s5] sm:$0xff]   ;;  %v2391_v29 = vld [vmem:[%s3182_s5 + $0x8] sm:$0xff]   ;;  %s894_s10 = sadd.s32 1, %s2778_s10  }
 0x3cc   : >> { %v904_v23 = vld [vmem:[%s903_s22] sm:$0xff]  ;;  %p891_p11 = scmp.ge.s32.totalorder %s894_s10, 4  }
 0x3cd   : >> { %v898_v11 = vld [vmem:[%s897_s28] sm:$0xf]  ;;  %2190 = vmatpush3.bf16.msra.mxu1 %v904_v23  ;;  %s3346_s4 = sld [smem:[#allocation29_spill]] (%p891_p11)  ;;  %v2396_v43 = vld [vmem:[#allocation13 + $0x4] ss:$16 sps:$4 sm:$0xff] (%p891_p11)   ;;  %v2804_v10 = vmov (%p891_p11), 0  }
 0x3ce   : >> { %2195 = vmatprep.subr.bf16.mxu1 %v2802_v8  ;;  %v2398_v44 = vld [vmem:[#allocation13 + $0xc] ss:$16 sps:$4 sm:$0xff] (%p891_p11)   ;;  %v2400_v45 = vld [vmem:[#allocation13] ss:$16 sps:$4 sm:$0xff] (%p891_p11)   ;;  %v2401_v46 = vld [vmem:[#allocation13 + $0x8] ss:$16 sps:$4 sm:$0xff] (%p891_p11)   ;;  %1326 = vmatprep.subr.bf16.mxu0 (%p891_p11), %v2396_v43 }
 0x3cf   : > { %v2402_v47 = vld [vmem:[#allocation13 + $0x24] ss:$16 sps:$4 sm:$0xff] (%p891_p11)   ;;  %v2404_v48 = vld [vmem:[#allocation13 + $0x2c] ss:$16 sps:$4 sm:$0xff] (%p891_p11)   ;;  %v2406_v49 = vld [vmem:[#allocation13 + $0x20] ss:$16 sps:$4 sm:$0xff] (%p891_p11)  }
 0x3d0   : > { %v2407_v50 = vld [vmem:[#allocation13 + $0x28] ss:$16 sps:$4 sm:$0xff] (%p891_p11)   ;;  %v2408_v51 = vld [vmem:[#allocation13 + $0x44] ss:$16 sps:$4 sm:$0xff] (%p891_p11)   ;;  %v2410_v52 = vld [vmem:[#allocation13 + $0x4c] ss:$16 sps:$4 sm:$0xff] (%p891_p11)  }
 0x3d1   : > { %v2412_v57 = vld [vmem:[#allocation13 + $0x40] ss:$16 sps:$4 sm:$0xff] (%p891_p11)   ;;  %v2413_v58 = vld [vmem:[#allocation13 + $0x48] ss:$16 sps:$4 sm:$0xff] (%p891_p11)   ;;  %v2416_v60 = vld [vmem:[#allocation13 + $0x6c] ss:$16 sps:$4 sm:$0xff] (%p891_p11)  }
 0x3d2   : >> { %2186 = vmatmul.mubr.msk.bf16.vlgmr.msra.gmra.mrb[0].mxu0 %vm905_vm5, %v898_v11  ;;  %v2418_v61 = vld [vmem:[#allocation13 + $0x60] ss:$16 sps:$4 sm:$0xff] (%p891_p11)   ;;  %v2419_v62 = vld [vmem:[#allocation13 + $0x68] ss:$16 sps:$4 sm:$0xff] (%p891_p11)   ;;  %v2420_v63 = vld [vmem:[#allocation13 + $0x84] ss:$16 sps:$4 sm:$0xff] (%p891_p11)  }
 0x3d3   : > { %v2025_v40 = vld [vmem:[%s3346_s4] ss:$0 sm:$0xff] (%p891_p11)  ;;  %1327 = vmatpush1.bf16.msra.mxu0 (%p891_p11), %v2400_v45  ;;  %v2422_v1 = vld [vmem:[#allocation13 + $0x8c] ss:$16 sps:$4 sm:$0xff] (%p891_p11)   ;;  %v2424_v2 = vld [vmem:[#allocation13 + $0x80] ss:$16 sps:$4 sm:$0xff] (%p891_p11)   ;;  %1358 = vmatprep.mubr.bf16.mxu0 (%p891_p11), %v2804_v10 }
 0x3d4   : > { %1328 = vmatprep.subr.bf16.mxu0 (%p891_p11), %v2402_v47  ;;  %v2425_v3 = vld [vmem:[#allocation13 + $0x88] ss:$16 sps:$4 sm:$0xff] (%p891_p11)   ;;  %v2426_v4 = vld [vmem:[#allocation13 + $0xa4] ss:$16 sps:$4 sm:$0xff] (%p891_p11)   ;;  %v2428_v5 = vld [vmem:[#allocation13 + $0xac] ss:$16 sps:$4 sm:$0xff] (%p891_p11)  }
 0x3d5   : > { %v2430_v6 = vld [vmem:[#allocation13 + $0xa0] ss:$16 sps:$4 sm:$0xff] (%p891_p11)   ;;  %v2434_v9 = vld [vmem:[#allocation13 + $0xcc] ss:$16 sps:$4 sm:$0xff] (%p891_p11)   ;;  %s3347_s14 = sld [smem:[#allocation34_spill]] (%p891_p11)  ;;  %s3348_s13 = sld [smem:[#allocation35_spill]] (%p891_p11) }
 0x3d6   : > { %v2436_v11 = vld [vmem:[#allocation13 + $0xc0] ss:$16 sps:$4 sm:$0xff] (%p891_p11)   ;;  %v2464_v47 = vld [vmem:[#allocation15 + $0x68] sm:$0xff] (%p891_p11)   ;;  %s3349_s5 = sld [smem:[#allocation31_spill]] (%p891_p11)  ;;  %s3350_s11 = sld [smem:[#allocation33_spill]] (%p891_p11) }
 0x3d7   : > { %1329 = vmatpush1.bf16.msra.mxu0 (%p891_p11), %v2406_v49  ;;  %v2460_v43 = vld [vmem:[#allocation15 + $0x60] sm:$0xff] (%p891_p11)   ;;  %v2466_v49 = vld [vmem:[#allocation15 + $0x28] sm:$0xff] (%p891_p11)   ;;  %s2096_s21 = sshll.u32 (%p891_p11), %s2758_s17, 1  ;;  %s1820_s27 = sshll.u32 (%p891_p11), %s3131_s8, 4  ;;  %s3239_s27 = int_to_ptr.vmem [resolvable:$true] %s1820_s27 }
 0x3d8   : > { %1330 = vmatprep.subr.bf16.mxu0 (%p891_p11), %v2408_v51  ;;  %v2462_v45 = vld [vmem:[#allocation15 + $0x20] sm:$0xff] (%p891_p11)   ;;  %v2468_v51 = vld [vmem:[#allocation15 + $0x70] sm:$0xff] (%p891_p11)   ;;  %s1816_s4 = sadd.s32 (%p891_p11), %s2754_s16, %s2096_s21  ;;  %s3353_s22 = sld [smem:[#allocation38_spill]] (%p891_p11) }
 0x3d9   : > { %s2097_s7 = sshll.u32 (%p891_p11), %s1816_s4, 7  ;;  %s1805_s16 = scalar_lea.sflag (%p891_p11), [#allocation9], %s3113_s12 }
 0x3da   : > { %p3354_p10 = scmp.ne.s32.totalorder (%p891_p11), %s3337_s9, 0  ;;  %s2805_s21 = smov (%p891_p11), [#allocation16]  }
 0x3db   : > { %1331 = vmatpush1.bf16.msra.mxu0 (%p891_p11), %v2412_v57  ;;  %v2026_v23 = vld [vmem:[%s3347_s14] ss:$0 sm:$0xff] (%p891_p11)  ;;  %s3351_s14 = sld [smem:[#allocation36_spill]] (%p891_p11)  ;;  %s2658_s4 = sshll.u32 (%p891_p11), %s2805_s21, 4  ;;  %s2659_s4 = int_to_ptr.vmem [resolvable:$false] %s2658_s4 }
 0x3dc   : > { %v2474_v57 = vld [vmem:[#allocation15 + $0x38] sm:$0xff] (%p891_p11)   ;;  %s2660_s6 = scalar_lea.vmem (%p891_p11), %s2659_s4, 256  ;;  %p2661_p13 = scmp.lt.s32.totalorder (%p891_p11), %s3239_s27, %s2659_s4 }
 0x3de   : > { %s3237_s17 = scalar_lea.hbm (%p891_p11), %s3353_s22, %s2097_s7 }
 0x4a5   : >> { %v946_v12 = vpop.f32.mrb[0].mxu0 }
 0x4a6   : >> { %v947_v13 = vadd.f32 %v946_v12, %v3164_v59  ;;  %v2187_v14 = vpop.f32.mrb[1].mxu0  ;;  %v2414_v59 = vld [vmem:[#allocation13 + $0x64] ss:$16 sps:$4 sm:$0xff] (%p891_p11)   ;;  %v2437_v12 = vld [vmem:[#allocation13 + $0xc8] ss:$16 sps:$4 sm:$0xff] (%p891_p11)  }
 0x4a7   : >> { %v949_v15 = vpop.f32.mrb[2].mxu0  ;;  %1332 = vmatprep.subr.bf16.mxu0 (%p891_p11), %v2414_v59  ;;  %v2440_v14 = vld [vmem:[#allocation13 + $0xec] ss:$16 sps:$4 sm:$0xff] (%p891_p11)   ;;  %v1148_v59 = vsub.s32 (%p891_p11), 0, %v3158_v53 }
 0x4a8   : >> { %v2188_v16 = vpop.f32.mrb[3].mxu0  ;;  %v953_v17 = vsel %vm952_vm6, %v947_v13, -inf  ;;  %1333 = vmatpush1.bf16.msra.mxu0 (%p891_p11), %v2418_v61  ;;  %v2442_v15 = vld [vmem:[#allocation13 + $0xe0] ss:$16 sps:$4 sm:$0xff] (%p891_p11)   ;;  %v1144_v61 = vld [vmem:[%s3349_s5] sm:$0xf] (%p891_p11) }
 0x4a9   : >> { %954 = vmax.xlane.f32.xlu0 %v953_v17  ;;  %1334 = vmatprep.subr.bf16.mxu0 (%p891_p11), %v2420_v63  ;;  %v2443_v16 = vld [vmem:[#allocation13 + $0xe8] ss:$16 sps:$4 sm:$0xff] (%p891_p11)   ;;  %v2444_v17 = vld [vmem:[#allocation15 + $0x40] sm:$0xff] (%p891_p11)   ;;  %v1160_v63 = vsub.s32 (%p891_p11), 3, %v3158_v53 }
 0x4ac   : > { %1335 = vmatpush1.bf16.msra.mxu0 (%p891_p11), %v2424_v2 }
 0x4ad   : > { %1336 = vmatprep.subr.bf16.mxu0 (%p891_p11), %v2426_v4  ;;  %v1161_v4 = vrot.slane (%p891_p11), %v1144_v61, %v1160_v63 }
 0x4b0   : > { %1337 = vmatpush1.bf16.msra.mxu0 (%p891_p11), %v2430_v6 }
 0x536   : >> { %v955_v18 = vpop.xlane.xlu0 %954 }
 0x537   : >> { %v956_v19 = vsub.f32 %v947_v13, %v955_v18  ;;  %v2438_v13 = vld [vmem:[#allocation13 + $0xe4] ss:$16 sps:$4 sm:$0xff] (%p891_p11)  }
 0x538   : > { %v2445_v18 = vld [vmem:[#allocation15 + $0xc0] sm:$0xff] (%p891_p11)  }
 0x539   : >> { %v957_v20 = vmul.f32 1.442695, %v956_v19 }
 0x53b   : >> { %2392 = vpow2.f32 %v957_v20 }
 0x545   : >> { %v2393_v21 = vpop.eup %2392 }
 0x546   : >> { %v959_v22 = vsel %vm952_vm6, %v2393_v21, 0.0 }
 0x547   : >> { %960 = vadd.xlane.f32.xlu0 %v959_v22 }
 0x5d4   : >> { %v961_v24 = vpop.xlane.xlu0 %960 }
 0x5d5   : >> { %2394 = vrcp.f32 %v961_v24 }
 0x5df   : >> { %v2395_v25 = vpop.eup %2394 }
 0x5e0   : >> { %v963_v26 = vmul.f32 %v2395_v25, %v2393_v21  ;;  %v2027_v25 = vld [vmem:[%s3348_s13] ss:$0 sm:$0xff] (%p891_p11)  ;;  %s3352_s13 = sld [smem:[#allocation37_spill]] (%p891_p11) }
 0x5e2   : >> { %v964_v28 = vpack.c.bf16 %v963_v26, %v963_v26 }
 0x5e4   : >> { %2192 = vmatmul.mubr.msk.bf16.vlgmr.msra.gmra.mrb[0].mxu1 %vm952_vm6, %v964_v28  ;;  %v2446_v28 = vld [vmem:[#allocation15] sm:$0xff] (%p891_p11)  }
 0x5e5   : >> { %2196 = vmatpush3.bf16.msra.mxu1 %v2390_v27  ;;  %2199 = vmatprep.mubr.msk.bf16.mxu1 %vm2803_vm4, %v2802_v8 }
 0x5e6   : >> { %2197 = vmatprep.subr.bf16.mxu1 %v2802_v8  ;;  %v2432_v8 = vld [vmem:[#allocation13 + $0xc4] ss:$16 sps:$4 sm:$0xff] (%p891_p11)  }
 0x5e7   : > { %1338 = vmatprep.subr.bf16.mxu0 (%p891_p11), %v2432_v8 }
 0x5e8   : > { %1339 = vmatpush1.bf16.msra.mxu0 (%p891_p11), %v2436_v11 }
 0x5e9   : >> { %2198 = vmatpush3.bf16.msra.mxu1 %v2391_v29  ;;  %1340 = vmatprep.subr.bf16.mxu0 (%p891_p11), %v2438_v13  ;;  %v2447_v29 = vld [vmem:[#allocation15 + $0x80] sm:$0xff] (%p891_p11)  }
 0x5ea   : > { %1367 = vmatprep.subr.bf16.mxu1 (%p891_p11), %v2398_v44  ;;  %v2461_v44 = vld [vmem:[#allocation15 + $0xe0] sm:$0xff] (%p891_p11)  }
 0x5ec   : > { %1341 = vmatpush1.bf16.msra.mxu0 (%p891_p11), %v2442_v15 }
 0x5ed   : > { %2119 = vmatprep.subr.bf16.mxu0 (%p891_p11), %v2444_v17 }
 0x6b7   : >> { %v1002_v30 = vpop.f32.mrb[0].mxu1 }
 0x6b8   : >> { %v1017_v31 = vpack.c.bf16 %v1002_v30, %v1002_v30  ;;  %v2193_v32 = vpop.f32.mrb[1].mxu1 }
 0x6b9   : >> { %v1005_v33 = vpop.f32.mrb[2].mxu1  ;;  %v2449_v32 = vld [vmem:[#allocation15 + $0xc8] sm:$0xff] (%p891_p11)  }
 0x6ba   : >> { %v2194_v34 = vpop.f32.mrb[3].mxu1  ;;  %2200 = vmatmul.mubr.msk.bf16.vlgmr.msra.gmra.mrb[4].mxu1 %vm905_vm5, %v1017_v31  ;;  %v2448_v31 = vld [vmem:[#allocation15 + $0x48] sm:$0xff] (%p891_p11)  }
 0x6bb   : > { %1368 = vmatpush1.bf16.msra.mxu1 (%p891_p11), %v2401_v46  ;;  %1399 = vmatprep.mubr.bf16.mxu1 (%p891_p11), %v2804_v10  ;;  %v2450_v33 = vld [vmem:[#allocation15 + $0x8] sm:$0xff] (%p891_p11)   ;;  %v2463_v46 = vld [vmem:[#allocation15 + $0xa0] sm:$0xff] (%p891_p11)  }
 0x6bc   : > { %1369 = vmatprep.subr.bf16.mxu1 (%p891_p11), %v2404_v48  ;;  %v2451_v34 = vld [vmem:[#allocation15 + $0x88] sm:$0xff] (%p891_p11)  }
 0x6bd   : > { %v2465_v48 = vld [vmem:[#allocation15 + $0xe8] sm:$0xff] (%p891_p11)  }
 0x6bf   : > { %1370 = vmatpush1.bf16.msra.mxu1 (%p891_p11), %v2407_v50  ;;  %v2467_v50 = vld [vmem:[#allocation15 + $0xa8] sm:$0xff] (%p891_p11)  }
 0x6c0   : > { %1371 = vmatprep.subr.bf16.mxu1 (%p891_p11), %v2410_v52  ;;  %v2469_v52 = vld [vmem:[#allocation15 + $0xf0] sm:$0xff] (%p891_p11)  }
 0x6c3   : > { %1372 = vmatpush1.bf16.msra.mxu1 (%p891_p11), %v2413_v58  ;;  %v2475_v58 = vld [vmem:[#allocation15 + $0xb8] sm:$0xff] (%p891_p11)  }
 0x6c4   : > { %1373 = vmatprep.subr.bf16.mxu1 (%p891_p11), %v2416_v60  ;;  %v1156_v60 = vsub.s32 (%p891_p11), 2, %v3158_v53 }
 0x6c6   : > { %v1157_v2 = vrot.slane (%p891_p11), %v1144_v61, %v1156_v60 }
 0x6c7   : > { %1374 = vmatpush1.bf16.msra.mxu1 (%p891_p11), %v2419_v62  ;;  %v1152_v62 = vsub.s32 (%p891_p11), 1, %v3158_v53 }
 0x6c8   : > { %1375 = vmatprep.subr.bf16.mxu1 (%p891_p11), %v2422_v1  ;;  %v1149_v1 = vrot.slane (%p891_p11), %v1144_v61, %v1148_v59 }
 0x6cb   : > { %1376 = vmatpush1.bf16.msra.mxu1 (%p891_p11), %v2425_v3  ;;  %v1153_v3 = vrot.slane (%p891_p11), %v1144_v61, %v1152_v62 }
 0x6cc   : > { %1377 = vmatprep.subr.bf16.mxu1 (%p891_p11), %v2428_v5 }
 0x78a   : > { %893 = sbr.rel (!%p891_p11) target bundleno = 967 (0x3c7), region = 162 }
 0x78d   : >> { %v1067_v35 = vpop.f32.mrb[4].mxu1 }
 0x78e   : >> { %v1073_v36 = vadd.f32 %v2774_v7, %v1067_v35   ;;  %v2201_v37 = vpop.f32.mrb[5].mxu1  ;;  %v2452_v35 = vld [vmem:[#allocation15 + $0x50] sm:$0xff] (%p891_p11)  }
 0x78f   : >> { %v1070_v38 = vpop.f32.mrb[6].mxu1  ;;  %v2454_v37 = vld [vmem:[#allocation15 + $0x10] sm:$0xff] (%p891_p11)  }
 0x790   : >> { %v2202_v39 = vpop.f32.mrb[7].mxu1  ;;  %v3345_v7 = vmov %v1073_v36  ;;  %v1081_v41 = vadd.f32 (%p891_p11), %v2025_v40, %v1073_v36  ;;  %v2453_v36 = vld [vmem:[#allocation15 + $0xd0] sm:$0xff] (%p891_p11)   ;;  %v2457_v40 = vld [vmem:[#allocation15 + $0xd8] sm:$0xff] (%p891_p11)  }
 0x791   : > { %v2431_v7 = vld [vmem:[#allocation13 + $0xa8] ss:$16 sps:$4 sm:$0xff]   ;;  %v2455_v38 = vld [vmem:[#allocation15 + $0x90] sm:$0xff]  }
 0x792   : > { %v1082_v42 = vadd.f32 %v1081_v41, %v3129_v0  ;;  %1378 = vmatpush1.bf16.msra.mxu1 %v2431_v7  ;;  %v2456_v39 = vld [vmem:[#allocation15 + $0x58] sm:$0xff]  }
 0x793   : > { %1379 = vmatprep.subr.bf16.mxu1 %v2434_v9  ;;  %v2458_v41 = vld [vmem:[#allocation15 + $0x18] sm:$0xff]  }
 0x794   : > { %1083 = vadd.xlane.f32.xlu0 %v1082_v42 }
 0x796   : > { %1380 = vmatpush1.bf16.msra.mxu1 %v2437_v12 }
 0x797   : > { %1381 = vmatprep.subr.bf16.mxu1 %v2440_v14 }
 0x79a   : > { %1382 = vmatpush1.bf16.msra.mxu1 %v2443_v16 }
 0x79b   : > { %2141 = vmatprep.subr.bf16.mxu1 %v2445_v18 }
 0x821   : > { %v1084_v0 = vpop.xlane.xlu0 %1083 }
 0x822   : > { %v1086_v54 = vmul.f32 0.0078125, %v1084_v0  ;;  %v2470_v0 = vld [vmem:[#allocation15 + $0x30] sm:$0xff]  }
 0x824   : > { %v1087_v55 = vsub.f32 %v1082_v42, %v1086_v54  ;;  %v2459_v42 = vld [vmem:[#allocation15 + $0x98] sm:$0xff]   ;;  %v2471_v54 = vld [vmem:[#allocation15 + $0xb0] sm:$0xff]  }
 0x826   : > { %v1088_v56 = vmul.f32 %v1087_v55, %v1087_v55 }
 0x828   : > { %1089 = vadd.xlane.f32.xlu0 %v1088_v56  ;;  %v2473_v56 = vld [vmem:[#allocation15 + $0xf8] sm:$0xff]  }
 0x8b5   : > { %v1090_v19 = vpop.xlane.xlu0 %1089 }
 0x8b6   : > { %v1091_v20 = vmul.f32 0.0078125, %v1090_v19 }
 0x8b8   : > { %v1092_v21 = vadd.f32 1e-05, %v1091_v20 }
 0x8ba   : > { %2476 = vrsqrt.f32 %v1092_v21 }
 0x8c4   : > { %v2477_v22 = vpop.eup %2476 }
 0x8c5   : > { %v1094_v24 = vmul.f32 %v2477_v22, %v1087_v55  ;;  %v2472_v55 = vld [vmem:[#allocation15 + $0x78] sm:$0xff]  }
 0x8c7   : > { %v1102_v26 = vmul.f32 %v2026_v23, %v1094_v24 }
 0x8c9   : > { %v3210_v27 = vadd.f32 %v2027_v25, %v1102_v26 }
 0x8cb   : > { %v1111_v30 = vpack.c.bf16 %v3210_v27, %v3210_v27 }
 0x8cd   : > { %1359 = vmatmul.mubr.bf16.vlgmr.msra.gmra.mrb[0].mxu0 %v1111_v30  ;;  %1400 = vmatmul.mubr.bf16.vlgmr.msra.gmra.mrb[0].mxu1 %v1111_v30 }
 0x8ce   : > { %2120 = vmatpush3.bf16.msra.mxu0 %v2446_v28  ;;  %2142 = vmatpush3.bf16.msra.mxu1 %v2447_v29 }
 0x8cf   : > { %2121 = vmatprep.subr.bf16.mxu0 %v2448_v31  ;;  %2143 = vmatprep.subr.bf16.mxu1 %v2449_v32 }
 0x8d2   : > { %2122 = vmatpush3.bf16.msra.mxu0 %v2450_v33  ;;  %2144 = vmatpush3.bf16.msra.mxu1 %v2451_v34 }
 0x8d3   : > { %2123 = vmatprep.subr.bf16.mxu0 %v2452_v35  ;;  %2145 = vmatprep.subr.bf16.mxu1 %v2453_v36 }
 0x8d6   : > { %2124 = vmatpush3.bf16.msra.mxu0 %v2454_v37  ;;  %2146 = vmatpush3.bf16.msra.mxu1 %v2455_v38 }
 0x8d7   : > { %2125 = vmatprep.subr.bf16.mxu0 %v2456_v39  ;;  %2147 = vmatprep.subr.bf16.mxu1 %v2457_v40 }
 0x8da   : > { %2126 = vmatpush3.bf16.msra.mxu0 %v2458_v41  ;;  %2148 = vmatpush3.bf16.msra.mxu1 %v2459_v42 }
 0x8db   : > { %2127 = vmatprep.subr.bf16.mxu0 %v2460_v43  ;;  %2149 = vmatprep.subr.bf16.mxu1 %v2461_v44  ;;  %v2060_v43 = vld [vmem:[%s3350_s11] ss:$0 sm:$0xff]  ;;  %s2654_s11 = scalar_lea.vmem %s3239_s27, 128 }
 0x8dc   : > { %p2655_p2 = scmp.ne.s32.totalorder %s3239_s27, %s2654_s11  ;;  %p2662_p0 = scmp.lt.s32.totalorder %s2660_s6, %s2654_s11 }
 0x8de   : > { %2128 = vmatpush3.bf16.msra.mxu0 %v2462_v45  ;;  %2150 = vmatpush3.bf16.msra.mxu1 %v2463_v46  ;;  %p2656_p7 = pnand %p2655_p2, %p3354_p10  ;;  %p2663_p4 = por %p2662_p0, %p2661_p13 }
 0x8df   : > { %2129 = vmatprep.subr.bf16.mxu0 %v2464_v47  ;;  %2151 = vmatprep.subr.bf16.mxu1 %v2465_v48 }
 0x8e0   : > { %p2657_p3 = pneg %p2656_p7 }
 0x8e2   : > { %2130 = vmatpush3.bf16.msra.mxu0 %v2466_v49  ;;  %2152 = vmatpush3.bf16.msra.mxu1 %v2467_v50  ;;  %p2664_p6 = pnand %p2663_p4, %p2657_p3 }
 0x8e3   : > { %2131 = vmatprep.subr.bf16.mxu0 %v2468_v51  ;;  %2153 = vmatprep.subr.bf16.mxu1 %v2469_v52 }
 0x8e6   : > { %2132 = vmatpush3.bf16.msra.mxu0 %v2470_v0  ;;  %2154 = vmatpush3.bf16.msra.mxu1 %v2471_v54 }
 0x8e7   : > { %2133 = vmatprep.subr.bf16.mxu0 %v2472_v55  ;;  %2155 = vmatprep.subr.bf16.mxu1 %v2473_v56 }
 0x8ea   : > { %2134 = vmatpush3.bf16.msra.mxu0 %v2474_v57  ;;  %2156 = vmatpush3.bf16.msra.mxu1 %v2475_v58 }
 0x9a0   : > { %v1360_v5 = vpop.f32.mrb[0].mxu0  ;;  %v1401_v6 = vpop.f32.mrb[0].mxu1 }
 0x9a1   : > { %v1361_v7 = vadd.f32 %v1360_v5, %v1149_v1  ;;  %v1402_v8 = vadd.f32 %v1401_v6, %v1157_v2  ;;  %v1362_v9 = vpop.f32.mrb[1].mxu0  ;;  %v1403_v10 = vpop.f32.mrb[1].mxu1  ;;  %v2094_v1 = vld [vmem:[%s3352_s13] ss:$0 sm:$0xff] }
 0x9a2   : > { %v1363_v11 = vadd.f32 %v1362_v9, %v1153_v3  ;;  %v1404_v12 = vadd.f32 %v1403_v10, %v1161_v4  ;;  %v1364_v13 = vpop.f32.mrb[2].mxu0  ;;  %v1405_v14 = vpop.f32.mrb[2].mxu1 }
 0x9a3   : > { %v1412_v15 = vmul.f32 0.70710677, %v1361_v7  ;;  %v1414_v16 = vmul.f32 0.70710677, %v1402_v8  ;;  %v1365_v53 = vpop.f32.mrb[3].mxu0  ;;  %v1406_v19 = vpop.f32.mrb[3].mxu1 }
 0x9a4   : > { %v1413_v17 = vmul.f32 0.70710677, %v1363_v11  ;;  %v1415_v18 = vmul.f32 0.70710677, %v1404_v12  ;;  %v1408_v24 = vmul.f32 0.5, %v1361_v7  ;;  %v1410_v28 = vmul.f32 0.5, %v1402_v8 }
 0x9a5   : > { %2478 = verf.f32 %v1412_v15  ;;  %v1409_v29 = vmul.f32 0.5, %v1363_v11  ;;  %v1411_v32 = vmul.f32 0.5, %v1404_v12 }
 0x9a6   : > { %2480 = verf.f32 %v1414_v16 }
 0x9a7   : > { %2482 = verf.f32 %v1413_v17 }
 0x9a8   : > { %2484 = verf.f32 %v1415_v18 }
 0x9af   : > { %v2479_v20 = vpop.eup %2478 }
 0x9b0   : > { %v2481_v21 = vpop.eup %2480  ;;  %v1420_v22 = vadd.f32 1.0, %v2479_v20 }
 0x9b1   : > { %v2483_v23 = vpop.eup %2482  ;;  %v1422_v25 = vadd.f32 1.0, %v2481_v21 }
 0x9b2   : > { %v2485_v26 = vpop.eup %2484  ;;  %v1421_v30 = vadd.f32 1.0, %v2483_v23  ;;  %v1424_v31 = vmul.f32 %v1420_v22, %v1408_v24 }
 0x9b3   : > { %v1423_v33 = vadd.f32 1.0, %v2485_v26  ;;  %v1426_v34 = vmul.f32 %v1422_v25, %v1410_v28 }
 0x9b4   : > { %v1425_v35 = vmul.f32 %v1421_v30, %v1409_v29  ;;  %v1428_v38 = vpack.c.bf16 %v1424_v31, %v1424_v31 }
 0x9b5   : > { %v1427_v36 = vmul.f32 %v1423_v33, %v1411_v32  ;;  %v1430_v40 = vpack.c.bf16 %v1426_v34, %v1426_v34 }
 0x9b6   : > { %v1429_v37 = vpack.c.bf16 %v1425_v35, %v1425_v35 }
 0x9b7   : > { %v1431_v39 = vpack.c.bf16 %v1427_v36, %v1427_v36 }
 0x9b8   : > { %1727 = vmatprep.mubr.bf16.mxu0 %v1429_v37 }
 0x9b9   : > { %1767 = vmatprep.mubr.bf16.mxu1 %v1431_v39  ;;  %1728 = vmatmul.mubr.bf16.vlgmr.msra.gmra.mrb[4].mxu0 %v1428_v38 }
 0x9ba   : > { %1768 = vmatmul.mubr.bf16.vlgmr.msra.gmra.mrb[4].mxu1 %v1430_v40 }
 0xa8c   : > { %v2135_v41 = vpop.f32.mrb[4].mxu0 }
 0xa8d   : > { %v2157_v42 = vpop.f32.mrb[4].mxu1  ;;  %v2136_v44 = vpop.f32.mrb[5].mxu0 }
 0xa8e   : > { %v2137_v45 = vadd.f32 %v2136_v44, %v2135_v41  ;;  %v2158_v46 = vpop.f32.mrb[5].mxu1  ;;  %v2138_v47 = vpop.f32.mrb[6].mxu0 }
 0xa8f   : > { %v2159_v48 = vadd.f32 %v2158_v46, %v2157_v42  ;;  %v2160_v49 = vpop.f32.mrb[6].mxu1  ;;  %v2139_v50 = vpop.f32.mrb[7].mxu0 }
 0xa90   : > { %v1730_v51 = vadd.f32 %v2137_v45, %v2060_v43  ;;  %v2161_v52 = vpop.f32.mrb[7].mxu1 }
 0xa92   : > { %v1770_v0 = vadd.f32 %v2159_v48, %v1730_v51 }
 0xa94   : > { %v1775_v54 = vadd.f32 %v1770_v0, %v3210_v27  ;;  %v2093_v27 = vld [vmem:[%s3351_s14] ss:$0 sm:$0xff] }
 0xa96   : > { %1776 = vadd.xlane.f32.xlu1 %v1775_v54 }
 0xb23   : > { %v1777_v55 = vpop.xlane.xlu1 %1776 }
 0xb24   : > { %v1778_v56 = vmul.f32 0.0078125, %v1777_v55 }
 0xb26   : > { %v1779_v57 = vsub.f32 %v1775_v54, %v1778_v56 }
 0xb28   : > { %v1780_v58 = vmul.f32 %v1779_v57, %v1779_v57 }
 0xb2a   : > { %1781 = vadd.xlane.f32.xlu1 %v1780_v58 }
 0xbb7   : > { %v1782_v59 = vpop.xlane.xlu1 %1781 }
 0xbb8   : > { %v1783_v60 = vmul.f32 0.0078125, %v1782_v59 }
 0xbba   : > { %v1784_v61 = vadd.f32 1e-05, %v1783_v60 }
 0xbbc   : > { %2486 = vrsqrt.f32 %v1784_v61 }
 0xbc6   : > { %v2487_v62 = vpop.eup %2486 }
 0xbc7   : > { %v1786_v63 = vmul.f32 %v2487_v62, %v1779_v57 }
 0xbc9   : > { %v1794_v2 = vmul.f32 %v2093_v27, %v1786_v63 }
 0xbcb   : > { %v1802_v3 = vadd.f32 %v2094_v1, %v1794_v2 }
 0xbcd   : > { %1803 = vst [vmem:[%s3131_s8] sm:$0xff] %v1802_v3 }
 0xbce   : > { %2667 = shalt.err (!%p2664_p6)
}
 0xbcf   : > { %s2668_s12 = scalar_lea.hbm %s3237_s17, 128  ;;  %s2672_s14 = scalar_lea.hbm %s3353_s22, 512 }
 0xbd0   : > { %p2669_p1 = scmp.ne.s32.totalorder %s3237_s17, %s2668_s12  ;;  %p2673_p12 = scmp.lt.u32.totalorder %s3237_s17, %s3353_s22 }
 0xbd1   : > { %p2674_p8 = scmp.lt.u32.totalorder %s2672_s14, %s2668_s12  ;;  %p2676_p2 = scmp.lt.u32.totalorder %s2668_s12, %s3237_s17 }
 0xbd2   : > { %p2670_p5 = pnand %p2669_p1, %p3354_p10 }
 0xbd3   : > { %p2675_p11 = por %p2674_p8, %p2673_p12 }
 0xbd4   : > { %p2671_p9 = pneg %p2670_p5 }
 0xbd5   : > { %p2677_p7 = por %p2676_p2, %p2675_p11 }
 0xbd7   : > { %p2678_p3 = pnand %p2677_p7, %p2671_p9 }
 0xbd9   : > { %2681 = shalt.err (!%p2678_p3)
}
 0xbda   : > { %2221 = dma.vmem_to_hbm [thread:$0]  (%p3354_p10), %s3239_s27, 128, %s3237_s17, %s1805_s16  }
 0xbdb PF: > { %p2253_p13 = scmp.ge.s32.totalorder %s2770_s20, 2  ;;  %s1832_s13 = sand.u32 1, %s2742_s29  }
 0xbdc   : > { %p3355_p0 = scmp.ne.s32.totalorder %s3339_s25, 0  ;;  %s1833_s7 = scalar_lea.sflag [#allocation9], %s1832_s13 }
 0xbde   : > { %p2241_p4 = pnand %p2253_p13, %p3355_p0 }
 0xbe0   : > { %2737 = dma.done.wait (!%p2241_p4), %s1833_s7, 128  }
 0xbe1   : > { %2739 = vsyncadd (!%p2241_p4), %s1833_s7, 4294967168  ;;  %s32_s20 = sadd.s32 1, %s2770_s20   ;;  %s3356_s29 = smov %s2746_s30 }
 0xbe2   : > { %p29_p6 = scmp.ge.s32.totalorder %s32_s20, 6   ;;  %s3357_s30 = smov %s2750_s15 }
 0xbe3   : > { %s3358_s15 = smov %s3068_s2  ;;  %s3359_s16 = smov %s2762_s18 }
 0xbe4   : > { %s3360_s17 = smov %s2766_s19  ;;  %s3361_s18 = smov %s3364_s24 }
 0xbe5   : > { %s3362_s19 = smov %s3368_s26  ;;  %31 = sbr.rel (!%p29_p6) target bundleno = 23 (0x17), region = 173 }
 0xbec   :  { %1838 = vsyncpa [#allocation8], 1 }
 0xbed   :  { %1840 = vsyncpa [#allocation8 + $0x1], 1 }
 0xbee   :  { %1841 = vsyncpa [#allocation11], 1 }
 0xbef   :  { %1842 = vsyncpa [#allocation14], 1 }
 0xbf0   :  { %1843 = vsyncpa [#allocation9], 1 }
 0xbf1   :  { %1845 = vsyncpa [#allocation9 + $0x1], 1 }
 0xbf2   :  { %1846 = vsyncmov [#allocation6] }
 0xbf5   :  { %s1847_s9 = vpop.sfrf %1846 }
 0xbf6   :  { %p2100_p10 = scmp.ne.s32.totalorder %s1847_s9, 0 }
 0xbf8   :  { %1851 = shalt.err (%p2100_p10)  }

</bundles_post_ra>
